<compile_context>
chip_gen: v7x
topology: tpu7x:2x2x1
jax: 0.10.0
libtpu: 0.0.40
codegen_flags: <defaults>
</compile_context>

<pallas_src>
import functools

import numpy as np
import jax
import jax.numpy as jnp
from jax.experimental import pallas as pl
from jax.experimental.pallas import tpu as pltpu


# ----------------------------------------------------------------------------
# Kernels
# ----------------------------------------------------------------------------
def _src_lane_table(scale: int, width: int, rows_per_group: int) -> np.ndarray:
    """idx[l] = source lane (in the packed input row) feeding output lane l."""
    s, W, g = scale, width, rows_per_group
    l = np.arange(g * s * s * W)
    u = l // (s * s * W)          # which original row inside the packed group
    w = (l % (s * W)) // s        # which original column
    return (u * W + w).astype(np.int32)


def _up_gather_kernel(idx_ref, x_ref, o_ref, *, copies: int):
    """out[r, l] = x[r, idx[l]] via one static lane gather per block.

    idx_ref: (1, m_out)  static source-lane table, values in [0, m_in)
    x_ref:   (R, m_in)   packed input rows
    o_ref:   (R, m_out)  packed upsampled rows (m_out == copies * m_in == 128)
    """
    x = x_ref[...]
    # Widen the operand to m_out lanes so operand/index shapes match exactly
    # (canonical same-shape lane gather).  xw[:, j] == x[:, j % m_in].
    xw = jnp.concatenate([x] * copies, axis=-1)
    idx = jnp.broadcast_to(idx_ref[...], xw.shape)
    o_ref[...] = jnp.take_along_axis(xw, idx, axis=-1)


def _up_slice_kernel(x_ref, o_ref, *, scale: int, width: int,
                     rows_per_group: int):
    """Fallback: same permutation built from static lane slices + concats."""
    # TODO(synk): O(W) ops per block; only used for non-32-bit dtypes, output
    # rows wider than one vreg, or if the gather lowering is unavailable.
    s, W, g = scale, width, rows_per_group
    x = x_ref[...]
    chunks = []
    for u in range(g):
        row = x[:, u * W:(u + 1) * W]
        cols = []
        for w in range(W):
            col = row[:, w:w + 1]
            cols.extend([col] * s)
        rep = jnp.concatenate(cols, axis=-1)       # interleaved column repeat
        chunks.extend([rep] * s)                   # row (H) repeat
    o_ref[...] = jnp.concatenate(chunks, axis=-1)


# ----------------------------------------------------------------------------
# Tiling heuristics
# ----------------------------------------------------------------------------
def _choose_rows_per_group(H: int, W: int, s: int) -> int:
    """Rows packed per 'packed row' so the output minor dim is lane-dense."""
    per_row = s * s * W
    # Best case: one packed output row == exactly one 128-lane vreg.
    if 128 % per_row == 0 and H % (128 // per_row) == 0:
        return 128 // per_row
    # Otherwise smallest packing keeping output stores 128-aligned.
    for g in range(1, H + 1):
        if H % g == 0 and (g * per_row) % 128 == 0:
            return g
    return 1


def _choose_block_rows(total_rows: int, out_minor: int, itemsize: int,
                       target_out_bytes: int = 2 << 20) -> int:
    """Rows per block: ~2 MiB of output, dtype-aware sublane multiple,
    even number of grid steps when there is more than one."""
    sublane = max(8, (8 * 4) // itemsize)          # 8 f32 / 16 bf16 / 32 int8
    bytes_per_row = out_minor * itemsize
    r = max(1, target_out_bytes // bytes_per_row)
    r = max(sublane, (r // sublane) * sublane)
    rows_padded = ((total_rows + sublane - 1) // sublane) * sublane
    r = min(r, rows_padded)
    steps = pl.cdiv(total_rows, r)
    if steps > 1 and steps % 2 == 1:               # even split for dual-TC chips
        steps += 1
        r = ((pl.cdiv(total_rows, steps) + sublane - 1) // sublane) * sublane
    return r


# ----------------------------------------------------------------------------
# pallas_call wrapper
# ----------------------------------------------------------------------------
def _pallas_upsample(x2, s, W, g, rows_per_block, use_gather):
    rows, m_in = x2.shape
    m_out = g * s * s * W
    grid = (pl.cdiv(rows, rows_per_block),)
    compiler_params = pltpu.CompilerParams(
        dimension_semantics=("parallel",),
        vmem_limit_bytes=32 * 1024 * 1024)
    cost = pl.CostEstimate(
        flops=0, transcendentals=0,
        bytes_accessed=int(x2.size) * x2.dtype.itemsize * (1 + s * s))
    out_shape = jax.ShapeDtypeStruct((rows, m_out), x2.dtype)
    in_row_spec = pl.BlockSpec((rows_per_block, m_in), lambda i: (i, 0))
    out_row_spec = pl.BlockSpec((rows_per_block, m_out), lambda i: (i, 0))

    if use_gather:
        idx = jnp.asarray(_src_lane_table(s, W, g)).reshape(1, m_out)
        return pl.pallas_call(
            functools.partial(_up_gather_kernel, copies=s * s),
            out_shape=out_shape,
            grid=grid,
            in_specs=[pl.BlockSpec((1, m_out), lambda i: (0, 0)), in_row_spec],
            out_specs=out_row_spec,
            compiler_params=compiler_params,
            cost_estimate=cost,
        )(idx, x2)

    return pl.pallas_call(
        functools.partial(_up_slice_kernel, scale=s, width=W,
                          rows_per_group=g),
        out_shape=out_shape,
        grid=grid,
        in_specs=[in_row_spec],
        out_specs=out_row_spec,
        compiler_params=compiler_params,
        cost_estimate=cost,
    )(x2)


@functools.lru_cache(maxsize=None)
def _gather_path_available(s: int, W: int, g: int, dtype_name: str) -> bool:
    """One-time probe: does the lane-gather kernel lower (and match) here?"""
    try:
        dtype = jnp.dtype(dtype_name)
        m_in = g * W
        rows = 16
        xp = jnp.arange(rows * m_in, dtype=jnp.float32).astype(dtype)
        xp = xp.reshape(rows, m_in)
        out = _pallas_upsample(xp, s, W, g, rows_per_block=rows,
                               use_gather=True)
        out = np.asarray(jax.block_until_ready(out))
        expect = np.asarray(xp)[:, _src_lane_table(s, W, g)]
        return bool(np.array_equal(out, expect))
    except Exception:
        return False


# ----------------------------------------------------------------------------
# Public forward
# ----------------------------------------------------------------------------
def up_forward(x: jax.Array, scale_factor: int = 2) -> jax.Array:
    """Up.forward(x) for the module's default bilinear=True configuration,
    i.e. nn.Upsample(scale_factor, mode='nearest').
    x: (N, C, H, W) -> (N, C, s*H, s*W), bit-exact nearest-neighbor repeat.
    """
    # TODO(synk): bilinear=False branch (ConvTranspose2d k=2 s=2) not
    # implemented; the module's default/used path is the nearest Upsample.
    N, C, H, W = x.shape
    s = int(scale_factor)
    if s <= 1:
        return x

    g = _choose_rows_per_group(H, W, s)
    m_in, m_out = g * W, g * s * s * W
    rows = (N * C * H) // g

    # Free row-major regrouping (no data movement): one packed row = g original
    # image rows of the same plane.
    x2 = x.reshape(rows, m_in)

    itemsize = jnp.dtype(x.dtype).itemsize
    rows_per_block = _choose_block_rows(rows, m_out, itemsize)

    # Fast path: single-vreg (128-lane) output rows + 32-bit dtype -> one lane
    # gather per block.
    # TODO(synk): extend the gather path to m_out > 128 (large W) and to
    # 16-/8-bit dtypes; those cases use the slice+concat fallback.
    use_gather = (m_out == 128 and itemsize == 4
                  and _gather_path_available(s, W, g, str(jnp.dtype(x.dtype))))

    out = _pallas_upsample(x2, s, W, g, rows_per_block, use_gather)

    # (rows, m_out) is bit-for-bit the row-major layout of (N, C, s*H, s*W).
    return out.reshape(N, C, s * H, s * W)


if __name__ == "__main__":
    key = jax.random.PRNGKey(0)
    # Small NCHW input consistent with the module: batch=2, channels=4, 16x16.
    x = jax.random.normal(key, (2, 4, 16, 16), dtype=jnp.float32)

    y = jax.block_until_ready(up_forward(x, scale_factor=2))

    # Pure-JAX reference for nearest upsample (matches torch nn.Upsample 'nearest').
    ref = jnp.repeat(jnp.repeat(x, 2, axis=2), 2, axis=3)

    assert y.shape == (2, 4, 32, 32), y.shape
    assert bool(jnp.array_equal(y, ref)), "kernel output mismatch vs reference"

    print("KERNEL_OK")
</pallas_src>

<mosaic_0001>
module attributes {stable_mosaic.version = 11 : i64} {
  func.func @_up_gather_kernel(%arg0: i32, %arg1: memref<1x128xi32, #tpu.memory_space<vmem>>, %arg2: memref<16x32xf32, #tpu.memory_space<vmem>>, %arg3: memref<16x128xf32, #tpu.memory_space<vmem>>) attributes {dimension_semantics = [#tpu.dimension_semantics<parallel>], iteration_bounds = array<i64: 1>, scalar_prefetch = 0 : i64, scratch_operands = 0 : i64, tpu.core_type = #tpu.core_type<tc>, window_params = [{pipeline_mode = #tpu.pipeline_mode<synchronous>, transform_indices = @transform_0, window_bounds = array<i64: 1, 128>}, {transform_indices = @transform_1, window_bounds = array<i64: 16, 32>}, {transform_indices = @transform_2, window_bounds = array<i64: 16, 128>}]} {
    %c0 = arith.constant 0 : index
    %c0_0 = arith.constant 0 : index
    %0 = vector.load %arg2[%c0, %c0_0] : memref<16x32xf32, #tpu.memory_space<vmem>>, vector<16x32xf32>
    %1 = tpu.concatenate %0, %0, %0, %0 in 1 : vector<16x32xf32>, vector<16x32xf32>, vector<16x32xf32>, vector<16x32xf32> -> vector<16x128xf32>
    %c0_1 = arith.constant 0 : index
    %c0_2 = arith.constant 0 : index
    %2 = vector.load %arg1[%c0_1, %c0_2] : memref<1x128xi32, #tpu.memory_space<vmem>>, vector<1x128xi32>
    %3 = vector.shape_cast %2 : vector<1x128xi32> to vector<1x128xi32>
    %4 = vector.broadcast %3 : vector<1x128xi32> to vector<16x128xi32>
    %c0_i32 = arith.constant 0 : i32
    %5 = vector.broadcast %c0_i32 : i32 to vector<16x128xi32>
    %6 = arith.cmpi slt, %4, %5 : vector<16x128xi32>
    %c128_i32 = arith.constant 128 : i32
    %7 = vector.broadcast %c128_i32 : i32 to vector<16x128xi32>
    %8 = arith.addi %4, %7 : vector<16x128xi32>
    %9 = arith.select %6, %8, %4 : vector<16x128xi1>, vector<16x128xi32>
    %10 = vector.shape_cast %9 : vector<16x128xi32> to vector<16x128x1xi32>
    %11 = vector.shape_cast %10 : vector<16x128x1xi32> to vector<16x128xi32>
    %12 = tpu.dynamic_gather %1[%11] in [1] : vector<16x128xf32>, vector<16x128xi32> -> vector<16x128xf32>
    %c0_3 = arith.constant 0 : index
    %c0_4 = arith.constant 0 : index
    %13 = vector.load %arg3[%c0_3, %c0_4] : memref<16x128xf32, #tpu.memory_space<vmem>>, vector<16x128xf32>
    tpu.vector_store %arg3[%c0_3, %c0_4], %12 {strides = array<i32>} : memref<16x128xf32, #tpu.memory_space<vmem>>, vector<16x128xf32>,
    return
  }
  func.func @transform_0(%arg0: i32) -> (i32, i32) {
    %c0_i32 = arith.constant 0 : i32
    %c0_i32_0 = arith.constant 0 : i32
    %c0_i32_1 = arith.constant 0 : i32
    return %c0_i32, %c0_i32_0 : i32, i32
  }
  func.func @transform_1(%arg0: i32) -> (i32, i32) {
    %c0_i32 = arith.constant 0 : i32
    %c0_i32_0 = arith.constant 0 : i32
    return %arg0, %c0_i32 : i32, i32
  }
  func.func @transform_2(%arg0: i32) -> (i32, i32) {
    %c0_i32 = arith.constant 0 : i32
    %c0_i32_0 = arith.constant 0 : i32
    return %arg0, %c0_i32 : i32, i32
  }
}

module attributes {stable_mosaic.version = 11 : i64} {
  func.func @_up_slice_kernel(%arg0: i32, %arg1: memref<64x32xf32, #tpu.memory_space<vmem>>, %arg2: memref<64x128xf32, #tpu.memory_space<vmem>>) attributes {dimension_semantics = [#tpu.dimension_semantics<parallel>], iteration_bounds = array<i64: 1>, scalar_prefetch = 0 : i64, scratch_operands = 0 : i64, tpu.core_type = #tpu.core_type<tc>, window_params = [{transform_indices = @transform_0, window_bounds = array<i64: 64, 32>}, {transform_indices = @transform_1, window_bounds = array<i64: 64, 128>}]} {
    %c0 = arith.constant 0 : index
    %c0_0 = arith.constant 0 : index
    %0 = vector.load %arg1[%c0, %c0_0] : memref<64x32xf32, #tpu.memory_space<vmem>>, vector<64x32xf32>
    %1 = vector.extract_strided_slice %0 {offsets = [0, 0], sizes = [64, 16], strides = [1, 1]} : vector<64x32xf32> to vector<64x16xf32>
    %2 = vector.extract_strided_slice %1 {offsets = [0, 0], sizes = [64, 1], strides = [1, 1]} : vector<64x16xf32> to vector<64x1xf32>
    %3 = vector.extract_strided_slice %1 {offsets = [0, 1], sizes = [64, 1], strides = [1, 1]} : vector<64x16xf32> to vector<64x1xf32>
    %4 = vector.extract_strided_slice %1 {offsets = [0, 2], sizes = [64, 1], strides = [1, 1]} : vector<64x16xf32> to vector<64x1xf32>
    %5 = vector.extract_strided_slice %1 {offsets = [0, 3], sizes = [64, 1], strides = [1, 1]} : vector<64x16xf32> to vector<64x1xf32>
    %6 = vector.extract_strided_slice %1 {offsets = [0, 4], sizes = [64, 1], strides = [1, 1]} : vector<64x16xf32> to vector<64x1xf32>
    %7 = vector.extract_strided_slice %1 {offsets = [0, 5], sizes = [64, 1], strides = [1, 1]} : vector<64x16xf32> to vector<64x1xf32>
    %8 = vector.extract_strided_slice %1 {offsets = [0, 6], sizes = [64, 1], strides = [1, 1]} : vector<64x16xf32> to vector<64x1xf32>
    %9 = vector.extract_strided_slice %1 {offsets = [0, 7], sizes = [64, 1], strides = [1, 1]} : vector<64x16xf32> to vector<64x1xf32>
    %10 = vector.extract_strided_slice %1 {offsets = [0, 8], sizes = [64, 1], strides = [1, 1]} : vector<64x16xf32> to vector<64x1xf32>
    %11 = vector.extract_strided_slice %1 {offsets = [0, 9], sizes = [64, 1], strides = [1, 1]} : vector<64x16xf32> to vector<64x1xf32>
    %12 = vector.extract_strided_slice %1 {offsets = [0, 10], sizes = [64, 1], strides = [1, 1]} : vector<64x16xf32> to vector<64x1xf32>
    %13 = vector.extract_strided_slice %1 {offsets = [0, 11], sizes = [64, 1], strides = [1, 1]} : vector<64x16xf32> to vector<64x1xf32>
    %14 = vector.extract_strided_slice %1 {offsets = [0, 12], sizes = [64, 1], strides = [1, 1]} : vector<64x16xf32> to vector<64x1xf32>
    %15 = vector.extract_strided_slice %1 {offsets = [0, 13], sizes = [64, 1], strides = [1, 1]} : vector<64x16xf32> to vector<64x1xf32>
    %16 = vector.extract_strided_slice %1 {offsets = [0, 14], sizes = [64, 1], strides = [1, 1]} : vector<64x16xf32> to vector<64x1xf32>
    %17 = vector.extract_strided_slice %1 {offsets = [0, 15], sizes = [64, 1], strides = [1, 1]} : vector<64x16xf32> to vector<64x1xf32>
    %18 = tpu.concatenate %2, %2, %3, %3, %4, %4, %5, %5, %6, %6, %7, %7, %8, %8, %9, %9 in 1 : vector<64x1xf32>, vector<64x1xf32>, vector<64x1xf32>, vector<64x1xf32>, vector<64x1xf32>, vector<64x1xf32>, vector<64x1xf32>, vector<64x1xf32>, vector<64x1xf32>, vector<64x1xf32>, vector<64x1xf32>, vector<64x1xf32>, vector<64x1xf32>, vector<64x1xf32>, vector<64x1xf32>, vector<64x1xf32> -> vector<64x16xf32>
    %19 = tpu.concatenate %10, %10, %11, %11, %12, %12, %13, %13, %14, %14, %15, %15, %16, %16, %17, %17 in 1 : vector<64x1xf32>, vector<64x1xf32>, vector<64x1xf32>, vector<64x1xf32>, vector<64x1xf32>, vector<64x1xf32>, vector<64x1xf32>, vector<64x1xf32>, vector<64x1xf32>, vector<64x1xf32>, vector<64x1xf32>, vector<64x1xf32>, vector<64x1xf32>, vector<64x1xf32>, vector<64x1xf32>, vector<64x1xf32> -> vector<64x16xf32>
    %20 = tpu.concatenate %18, %19 in 1 : vector<64x16xf32>, vector<64x16xf32> -> vector<64x32xf32>
    %21 = vector.extract_strided_slice %0 {offsets = [0, 16], sizes = [64, 16], strides = [1, 1]} : vector<64x32xf32> to vector<64x16xf32>
    %22 = vector.extract_strided_slice %21 {offsets = [0, 0], sizes = [64, 1], strides = [1, 1]} : vector<64x16xf32> to vector<64x1xf32>
    %23 = vector.extract_strided_slice %21 {offsets = [0, 1], sizes = [64, 1], strides = [1, 1]} : vector<64x16xf32> to vector<64x1xf32>
    %24 = vector.extract_strided_slice %21 {offsets = [0, 2], sizes = [64, 1], strides = [1, 1]} : vector<64x16xf32> to vector<64x1xf32>
    %25 = vector.extract_strided_slice %21 {offsets = [0, 3], sizes = [64, 1], strides = [1, 1]} : vector<64x16xf32> to vector<64x1xf32>
    %26 = vector.extract_strided_slice %21 {offsets = [0, 4], sizes = [64, 1], strides = [1, 1]} : vector<64x16xf32> to vector<64x1xf32>
    %27 = vector.extract_strided_slice %21 {offsets = [0, 5], sizes = [64, 1], strides = [1, 1]} : vector<64x16xf32> to vector<64x1xf32>
    %28 = vector.extract_strided_slice %21 {offsets = [0, 6], sizes = [64, 1], strides = [1, 1]} : vector<64x16xf32> to vector<64x1xf32>
    %29 = vector.extract_strided_slice %21 {offsets = [0, 7], sizes = [64, 1], strides = [1, 1]} : vector<64x16xf32> to vector<64x1xf32>
    %30 = vector.extract_strided_slice %21 {offsets = [0, 8], sizes = [64, 1], strides = [1, 1]} : vector<64x16xf32> to vector<64x1xf32>
    %31 = vector.extract_strided_slice %21 {offsets = [0, 9], sizes = [64, 1], strides = [1, 1]} : vector<64x16xf32> to vector<64x1xf32>
    %32 = vector.extract_strided_slice %21 {offsets = [0, 10], sizes = [64, 1], strides = [1, 1]} : vector<64x16xf32> to vector<64x1xf32>
    %33 = vector.extract_strided_slice %21 {offsets = [0, 11], sizes = [64, 1], strides = [1, 1]} : vector<64x16xf32> to vector<64x1xf32>
    %34 = vector.extract_strided_slice %21 {offsets = [0, 12], sizes = [64, 1], strides = [1, 1]} : vector<64x16xf32> to vector<64x1xf32>
    %35 = vector.extract_strided_slice %21 {offsets = [0, 13], sizes = [64, 1], strides = [1, 1]} : vector<64x16xf32> to vector<64x1xf32>
    %36 = vector.extract_strided_slice %21 {offsets = [0, 14], sizes = [64, 1], strides = [1, 1]} : vector<64x16xf32> to vector<64x1xf32>
    %37 = vector.extract_strided_slice %21 {offsets = [0, 15], sizes = [64, 1], strides = [1, 1]} : vector<64x16xf32> to vector<64x1xf32>
    %38 = tpu.concatenate %22, %22, %23, %23, %24, %24, %25, %25, %26, %26, %27, %27, %28, %28, %29, %29 in 1 : vector<64x1xf32>, vector<64x1xf32>, vector<64x1xf32>, vector<64x1xf32>, vector<64x1xf32>, vector<64x1xf32>, vector<64x1xf32>, vector<64x1xf32>, vector<64x1xf32>, vector<64x1xf32>, vector<64x1xf32>, vector<64x1xf32>, vector<64x1xf32>, vector<64x1xf32>, vector<64x1xf32>, vector<64x1xf32> -> vector<64x16xf32>
    %39 = tpu.concatenate %30, %30, %31, %31, %32, %32, %33, %33, %34, %34, %35, %35, %36, %36, %37, %37 in 1 : vector<64x1xf32>, vector<64x1xf32>, vector<64x1xf32>, vector<64x1xf32>, vector<64x1xf32>, vector<64x1xf32>, vector<64x1xf32>, vector<64x1xf32>, vector<64x1xf32>, vector<64x1xf32>, vector<64x1xf32>, vector<64x1xf32>, vector<64x1xf32>, vector<64x1xf32>, vector<64x1xf32>, vector<64x1xf32> -> vector<64x16xf32>
    %40 = tpu.concatenate %38, %39 in 1 : vector<64x16xf32>, vector<64x16xf32> -> vector<64x32xf32>
    %41 = tpu.concatenate %20, %20, %40, %40 in 1 : vector<64x32xf32>, vector<64x32xf32>, vector<64x32xf32>, vector<64x32xf32> -> vector<64x128xf32>
    %c0_1 = arith.constant 0 : index
    %c0_2 = arith.constant 0 : index
    %42 = vector.load %arg2[%c0_1, %c0_2] : memref<64x128xf32, #tpu.memory_space<vmem>>, vector<64x128xf32>
    tpu.vector_store %arg2[%c0_1, %c0_2], %41 {strides = array<i32>} : memref<64x128xf32, #tpu.memory_space<vmem>>, vector<64x128xf32>,
    return
  }
  func.func @transform_0(%arg0: i32) -> (i32, i32) {
    %c0_i32 = arith.constant 0 : i32
    %c0_i32_0 = arith.constant 0 : i32
    return %arg0, %c0_i32 : i32, i32
  }
  func.func @transform_1(%arg0: i32) -> (i32, i32) {
    %c0_i32 = arith.constant 0 : i32
    %c0_i32_0 = arith.constant 0 : i32
    return %arg0, %c0_i32 : i32, i32
  }
}

</mosaic_0001>

<bundles_post_ra>
// kernel: tpu_custom_call.1
= control target key start
LH: loop header
LB: loop body
LE: loop exit
PB: predicated region body
PF: predicated region fallthrough
CT: control target
= control target key end

     0   :  { %7 = vsyncpa [#allocation3], 0  ;;  %s258_s0 = inlined_call_operand.hbm [shape: s32[1,128], index: 0, kind: input, shape index: {}]   ;;  %s259_s1 = inlined_call_operand.hbm [shape: f32[16,32], index: 1, kind: input, shape index: {}]   ;;  %s260_s2 = inlined_call_operand.hbm [shape: f32[16,128], index: 2, kind: output, shape index: {}]  }
   0x1   :  { %8 = vsyncpa [#allocation6], 0 }
   0x2   :  { %9 = vsyncpa [#allocation4], 0  ;;  %s186_s9 = smov [#allocation2]   ;;  %s187_s11 = smov [#allocation5]  }
   0x3   :  { %s16_s10 = sshll.u32 %s186_s9, 4  ;;  %s25_s12 = sshll.u32 %s187_s11, 4  ;;  %s17_s10 = int_to_ptr.vmem [resolvable:$true] %s16_s10  ;;  %s209_s12 = int_to_ptr.vmem [resolvable:$true] %s25_s12 }
   0x4   :  { %s114_s15 = scalar_lea.hbm %s258_s0, 16 }
   0x5   :  { %p115_p0 = scmp.ne.s32.totalorder %s258_s0, %s114_s15  ;;  %p118_p1 = scmp.lt.u32.totalorder %s114_s15, %s258_s0 }
   0x7   :  { %p120_p2 = pnand %p118_p1, %p115_p0 }
   0x9   :  { %123 = shalt.err (!%p120_p2)
}
   0xa   :  { %s124_s20 = scalar_lea.vmem %s17_s10, 16  ;;  %s128_s21 = scalar_lea.vmem %s17_s10, 32 }
   0xb   :  { %p125_p3 = scmp.ne.s32.totalorder %s17_s10, %s124_s20  ;;  %p129_p4 = scmp.lt.s32.totalorder %s17_s10, %s17_s10 }
   0xc   :  { %p130_p5 = scmp.lt.s32.totalorder %s128_s21, %s124_s20 }
   0xe   :  { %p131_p6 = por %p130_p5, %p129_p4 }
  0x10   :  { %p132_p7 = pnand %p131_p6, %p125_p3 }
  0x12   :  { %135 = shalt.err (!%p132_p7)
}
  0x13   :  { %19 = dma.hbm_to_vmem [thread:$0]  %s258_s0, 16, %s17_s10, [#allocation3]  }
  0x14   :  { %s136_s26 = scalar_lea.hbm %s259_s1, 256 }
  0x15   :  { %p137_p8 = scmp.ne.s32.totalorder %s259_s1, %s136_s26  ;;  %p140_p9 = scmp.lt.u32.totalorder %s136_s26, %s259_s1 }
  0x17   :  { %p142_p10 = pnand %p140_p9, %p137_p8 }
  0x19   :  { %145 = shalt.err (!%p142_p10)
}
  0x1a   :  { %s146_s3 = scalar_lea.vmem %s209_s12, 256  ;;  %p151_p12 = scmp.lt.s32.totalorder %s209_s12, %s209_s12 }
  0x1b   :  { %p147_p11 = scmp.ne.s32.totalorder %s209_s12, %s146_s3  ;;  %p152_p13 = scmp.lt.s32.totalorder %s146_s3, %s146_s3 }
  0x1d   :  { %p153_p0 = por %p152_p13, %p151_p12 }
  0x1f   :  { %p154_p1 = pnand %p153_p0, %p147_p11 }
  0x21   :  { %157 = shalt.err (!%p154_p1)
}
  0x22   :  { %s188_s0 = smov 128   ;;  %s189_s4 = smov 8  }
  0x23   :  { %31 = dma.hbm_to_vmem [thread:$0]  %s259_s1, 256, %s209_s12, [#allocation6], %s188_s0, %s188_s0, %s189_s4  }
  0x24   :  { %180 = dma.done.wait [#allocation3], 16  }
  0x25   :  { %181 = vsyncadd [#allocation3], 4294967280 }
  0x26   :  { %182 = dma.done.wait [#allocation6], 256  }
  0x27   :  { %183 = vsyncadd [#allocation6], 4294967040  ;;  %v38_v0 = vld [vmem:[#allocation5] sm:$0xff]  ;;  %v103_v1 = vld [vmem:[#allocation2] ss:$0 sm:$0xff]  ;;  %s190_s7 = smov 64  }
  0x28   :  { %48 = vrot.lane.b32.xlu1 %v38_v0, %s190_s7  ;;  %s191_s8 = smov 32   ;;  %vm74_vm0 = vcmp.lt.s32.totalorder %v103_v1, 0  ;;  %v75_v2 = vadd.s32 128, %v103_v1  ;;  %v39_v3 = vld [vmem:[#allocation5 + $0x8] sm:$0xff]  ;;  %s192_s9 = smov 96   ;;  %vm60_vm1 = vcmask 261120  }
  0x29   :  { %42 = vrot.lane.b32.xlu0 %v38_v0, %s191_s8  ;;  %vm63_vm2 = vcmask 523264   ;;  %vm66_vm3 = vcmask 785408   ;;  %s193_s1 = smov [#allocation7]  }
  0x2a   :  { %v76_v4 = vsel %vm74_vm0, %v75_v2, %v103_v1  ;;  %s90_s10 = sshll.u32 %s193_s1, 4  ;;  %s91_s10 = int_to_ptr.vmem [resolvable:$true] %s90_s10 }
  0x2b   :  { %113 = vset.pattern.permute.xlu1 %v76_v4  ;;  %112 = vset.pattern.permute.xlu0 %v76_v4  ;;  %s158_s11 = scalar_lea.vmem %s91_s10, 256  ;;  %p163_p3 = scmp.lt.s32.totalorder %s91_s10, %s91_s10 }
  0x2c   :  { %50 = vrot.lane.b32.xlu1 %v39_v3, %s190_s7  ;;  %p159_p2 = scmp.ne.s32.totalorder %s91_s10, %s158_s11  ;;  %p164_p4 = scmp.lt.s32.totalorder %s158_s11, %s158_s11 }
  0x2d   :  { %44 = vrot.lane.b32.xlu0 %v39_v3, %s191_s8 }
  0x2e   :  { %p165_p5 = por %p164_p4, %p163_p3 }
  0x30   :  { %56 = vrot.lane.b32.xlu1 %v39_v3, %s192_s9  ;;  %p166_p6 = pnand %p165_p5, %p159_p2 }
  0x31   :  { %54 = vrot.lane.b32.xlu0 %v38_v0, %s192_s9 }
  0x9a   :  { %v49_v5 = vpop.permute.xlu1 %48 }
  0x9b   :  { %v43_v6 = vpop.permute.xlu0 %42 }
  0x9c   :  { %v61_v9 = vsel %vm60_vm1, %v38_v0, %v43_v6 }
  0x9d   :  { %v64_v14 = vsel %vm63_vm2, %v61_v9, %v49_v5 }
  0x9e   :  { %v51_v7 = vpop.permute.xlu1 %50 }
  0x9f   :  { %v45_v8 = vpop.permute.xlu0 %44 }
  0xa0   :  { %v62_v10 = vsel %vm60_vm1, %v39_v3, %v45_v8 }
  0xa1   :  { %v65_v13 = vsel %vm63_vm2, %v62_v10, %v51_v7 }
  0xa2   :  { %v57_v11 = vpop.permute.xlu1 %56 }
  0xa3   :  { %v55_v12 = vpop.permute.xlu0 %54  ;;  %v68_v15 = vsel %vm66_vm3, %v65_v13, %v57_v11 }
  0xa4   :  { %v67_v16 = vsel %vm66_vm3, %v64_v14, %v55_v12  ;;  %81 = vperm.xlu1 %113, %v68_v15  }
  0xa5   :  { %78 = vperm.xlu0 %112, %v67_v16  }
 0x123   :  { %v82_v17 = vpop.permute.xlu1 %81 }
 0x124   :  { %v79_v18 = vpop.permute.xlu0 %78  ;;  %84 = vst [vmem:[#allocation7 + $0x8] sm:$0xff] %v82_v17 }
 0x125   :  { %83 = vst [vmem:[#allocation7] sm:$0xff] %v79_v18 }
 0x126   :  { %169 = shalt.err (!%p166_p6)
}
 0x127   :  { %s170_s14 = scalar_lea.hbm %s260_s2, 256 }
 0x128   :  { %p171_p7 = scmp.ne.s32.totalorder %s260_s2, %s170_s14  ;;  %p174_p8 = scmp.lt.u32.totalorder %s170_s14, %s260_s2 }
 0x12a   :  { %p176_p9 = pnand %p174_p8, %p171_p7 }
 0x12c   :  { %179 = shalt.err (!%p176_p9)
}
 0x12d   :  { %96 = dma.vmem_to_hbm [thread:$0]  %s91_s10, 256, %s260_s2, [#allocation4], %s188_s0, %s188_s0, %s189_s4  }
 0x12e   :  { %184 = dma.done.wait [#allocation4], 256  }
 0x12f   :  { %185 = vsyncadd [#allocation4], 4294967040 }
 0x130   :  { %100 = vsyncpa [#allocation3], 1 }
 0x131   :  { %101 = vsyncpa [#allocation6], 1 }
 0x132   :  { %102 = vsyncpa [#allocation4], 1 }

// kernel: tpu_custom_call.1
= control target key start
LH: loop header
LB: loop body
LE: loop exit
PB: predicated region body
PF: predicated region fallthrough
CT: control target
= control target key end

     0   :  { %s1578_s10 = smov 1   ;;  %s3484_s0 = inlined_call_operand.vmem [shape: f32[64,32], index: 0, kind: input, shape index: {}]   ;;  %s3485_s1 = inlined_call_operand.hbm [shape: f32[64,128], index: 1, kind: output, shape index: {}]  }
   0x1   :  { %v1629_v0 = vld [vmem:[%s3484_s0 + $0x10] sm:$0xff]  ;;  %v1634_v1 = vld [vmem:[%s3484_s0] sm:$0xff]  ;;  %v1641_v2 = vld [vmem:[%s3484_s0 + $0x18] sm:$0xff] }
   0x2   :  { %29 = vrot.lane.b32.xlu1 %v1629_v0, %s1578_s10  ;;  %25 = vrot.lane.b32.xlu0 %v1634_v1, %s1578_s10  ;;  %v1646_v3 = vld [vmem:[%s3484_s0 + $0x8] sm:$0xff] }
   0x3   :  { %6 = vsyncpa [#allocation3], 0  ;;  %v1653_v4 = vld [vmem:[%s3484_s0 + $0x28] sm:$0xff]  ;;  %v1658_v5 = vld [vmem:[%s3484_s0 + $0x20] sm:$0xff]  ;;  %s1579_s23 = smov 2   ;;  %s1580_s24 = smov 3  }
   0x4   :  { %v1665_v6 = vld [vmem:[%s3484_s0 + $0x38] sm:$0xff]  ;;  %v1670_v7 = vld [vmem:[%s3484_s0 + $0x30] sm:$0xff]  ;;  %s1581_s25 = smov 4   ;;  %s1582_s26 = smov 5   ;;  %vm217_vm0 = vcmask 7168   ;;  %vm226_vm1 = vcmask 15360  }
   0x5   :  { %s1583_s27 = smov 6   ;;  %s1584_s28 = smov 7   ;;  %vm235_vm2 = vcmask 23552   ;;  %vm244_vm3 = vcmask 31744   ;;  %vm253_vm4 = vcmask 39936   ;;  %vm262_vm5 = vcmask 48128  }
   0x6   :  { %31 = vrot.lane.b32.xlu1 %v1641_v2, %s1578_s10  ;;  %27 = vrot.lane.b32.xlu0 %v1646_v3, %s1578_s10  ;;  %s1585_s29 = smov 8   ;;  %s1586_s30 = smov 120   ;;  %vm271_vm6 = vcmask 56320   ;;  %vm280_vm7 = vcmask 64512   ;;  %vm289_vm8 = vcmask 72704   ;;  %vm298_vm9 = vcmask 80896  }
   0x7   :  { %s1587_s2 = smov 121   ;;  %s1588_s3 = smov 122   ;;  %vm307_vm10 = vcmask 89088   ;;  %vm316_vm11 = vcmask 97280   ;;  %vm325_vm12 = vcmask 105472   ;;  %vm334_vm13 = vcmask 113664  }
   0x8   :  { %s1589_s4 = smov 123   ;;  %s1590_s5 = smov 124   ;;  %vm343_vm14 = vcmask 121856   ;;  %vm696_vm15 = vcmask 130048  }
   0x9   :  { %s1591_s6 = smov 125   ;;  %s1592_s7 = smov 126  }
   0xa   :  { %35 = vrot.lane.b32.xlu1 %v1653_v4, %s1578_s10  ;;  %33 = vrot.lane.b32.xlu0 %v1658_v5, %s1578_s10  ;;  %s1593_s8 = smov 127   ;;  %s1594_s9 = smov 16  }
   0xb   :  { %s1596_s11 = smov 113   ;;  %s1597_s12 = smov 114  }
   0xc   :  { %s1598_s13 = smov 115   ;;  %s1599_s14 = smov 116  }
   0xd   :  { %s1600_s15 = smov 117   ;;  %s1601_s16 = smov 118  }
   0xe   :  { %39 = vrot.lane.b32.xlu1 %v1665_v6, %s1578_s10  ;;  %37 = vrot.lane.b32.xlu0 %v1670_v7, %s1578_s10  ;;  %s1595_s10 = smov 112   ;;  %s1602_s17 = smov 119  }
   0xf   :  { %s1603_s18 = smov 104  }
  0x12   :  { %51 = vrot.lane.b32.xlu1 %v1646_v3, %s1579_s23  ;;  %49 = vrot.lane.b32.xlu0 %v1634_v1, %s1579_s23 }
  0x16   :  { %55 = vrot.lane.b32.xlu1 %v1641_v2, %s1579_s23  ;;  %53 = vrot.lane.b32.xlu0 %v1629_v0, %s1579_s23 }
  0x1a   :  { %59 = vrot.lane.b32.xlu1 %v1653_v4, %s1579_s23  ;;  %57 = vrot.lane.b32.xlu0 %v1658_v5, %s1579_s23 }
  0x1e   :  { %63 = vrot.lane.b32.xlu1 %v1665_v6, %s1579_s23  ;;  %61 = vrot.lane.b32.xlu0 %v1670_v7, %s1579_s23 }
  0x22   :  { %75 = vrot.lane.b32.xlu1 %v1646_v3, %s1580_s24  ;;  %73 = vrot.lane.b32.xlu0 %v1634_v1, %s1580_s24 }
  0x26   :  { %79 = vrot.lane.b32.xlu1 %v1641_v2, %s1580_s24  ;;  %77 = vrot.lane.b32.xlu0 %v1629_v0, %s1580_s24 }
  0x2a   :  { %83 = vrot.lane.b32.xlu1 %v1653_v4, %s1580_s24  ;;  %81 = vrot.lane.b32.xlu0 %v1658_v5, %s1580_s24 }
  0x2e   :  { %87 = vrot.lane.b32.xlu1 %v1665_v6, %s1580_s24  ;;  %85 = vrot.lane.b32.xlu0 %v1670_v7, %s1580_s24 }
  0x32   :  { %99 = vrot.lane.b32.xlu1 %v1646_v3, %s1581_s25  ;;  %97 = vrot.lane.b32.xlu0 %v1634_v1, %s1581_s25 }
  0x36   :  { %103 = vrot.lane.b32.xlu1 %v1641_v2, %s1581_s25  ;;  %101 = vrot.lane.b32.xlu0 %v1629_v0, %s1581_s25 }
  0x3a   :  { %107 = vrot.lane.b32.xlu1 %v1653_v4, %s1581_s25  ;;  %105 = vrot.lane.b32.xlu0 %v1658_v5, %s1581_s25 }
  0x3e   :  { %111 = vrot.lane.b32.xlu1 %v1665_v6, %s1581_s25  ;;  %109 = vrot.lane.b32.xlu0 %v1670_v7, %s1581_s25 }
  0x42   :  { %123 = vrot.lane.b32.xlu1 %v1646_v3, %s1582_s26  ;;  %121 = vrot.lane.b32.xlu0 %v1634_v1, %s1582_s26 }
  0x46   :  { %127 = vrot.lane.b32.xlu1 %v1641_v2, %s1582_s26  ;;  %125 = vrot.lane.b32.xlu0 %v1629_v0, %s1582_s26 }
  0x4a   :  { %131 = vrot.lane.b32.xlu1 %v1653_v4, %s1582_s26  ;;  %129 = vrot.lane.b32.xlu0 %v1658_v5, %s1582_s26 }
  0x4e   :  { %135 = vrot.lane.b32.xlu1 %v1665_v6, %s1582_s26  ;;  %133 = vrot.lane.b32.xlu0 %v1670_v7, %s1582_s26 }
  0x52   :  { %147 = vrot.lane.b32.xlu1 %v1646_v3, %s1583_s27  ;;  %145 = vrot.lane.b32.xlu0 %v1634_v1, %s1583_s27 }
  0x56   :  { %151 = vrot.lane.b32.xlu1 %v1641_v2, %s1583_s27  ;;  %149 = vrot.lane.b32.xlu0 %v1629_v0, %s1583_s27 }
  0x5a   :  { %155 = vrot.lane.b32.xlu1 %v1653_v4, %s1583_s27  ;;  %153 = vrot.lane.b32.xlu0 %v1658_v5, %s1583_s27 }
  0x5e   :  { %159 = vrot.lane.b32.xlu1 %v1665_v6, %s1583_s27  ;;  %157 = vrot.lane.b32.xlu0 %v1670_v7, %s1583_s27 }
  0x62   :  { %171 = vrot.lane.b32.xlu1 %v1646_v3, %s1584_s28  ;;  %169 = vrot.lane.b32.xlu0 %v1634_v1, %s1584_s28 }
  0x66   :  { %175 = vrot.lane.b32.xlu1 %v1641_v2, %s1584_s28  ;;  %173 = vrot.lane.b32.xlu0 %v1629_v0, %s1584_s28 }
  0x6a   :  { %179 = vrot.lane.b32.xlu1 %v1653_v4, %s1584_s28  ;;  %177 = vrot.lane.b32.xlu0 %v1658_v5, %s1584_s28 }
  0x6e   :  { %183 = vrot.lane.b32.xlu1 %v1665_v6, %s1584_s28  ;;  %181 = vrot.lane.b32.xlu0 %v1670_v7, %s1584_s28 }
  0x72   :  { %195 = vrot.lane.b32.xlu1 %v1646_v3, %s1585_s29  ;;  %193 = vrot.lane.b32.xlu0 %v1634_v1, %s1585_s29 }
  0x74   :  { %v1726_v8 = vpop.permute.xlu1 %29  ;;  %v1728_v9 = vpop.permute.xlu0 %25 }
  0x75   :  { %3605 = vst [vmem:[#allocation5_spill] sm:$0xff] %v1728_v9 }
  0x76   :  { %199 = vrot.lane.b32.xlu1 %v1641_v2, %s1585_s29  ;;  %197 = vrot.lane.b32.xlu0 %v1629_v0, %s1585_s29 }
  0x78   :  { %v1734_v10 = vpop.permute.xlu1 %31  ;;  %v1736_v11 = vpop.permute.xlu0 %27 }
  0x79   :  { %3606 = vst [vmem:[#allocation6_spill] sm:$0xff] %v1734_v10 }
  0x7a   :  { %203 = vrot.lane.b32.xlu1 %v1653_v4, %s1585_s29  ;;  %201 = vrot.lane.b32.xlu0 %v1658_v5, %s1585_s29 }
  0x7c   :  { %v1742_v12 = vpop.permute.xlu1 %35  ;;  %v1744_v13 = vpop.permute.xlu0 %33 }
  0x7d   :  { %3607 = vst [vmem:[#allocation7_spill] sm:$0xff] %v1742_v12  ;;  %3608 = vst [vmem:[#allocation8_spill] sm:$0xff] %v1744_v13 }
  0x7e   :  { %207 = vrot.lane.b32.xlu1 %v1665_v6, %s1585_s29  ;;  %205 = vrot.lane.b32.xlu0 %v1670_v7, %s1585_s29 }
  0x80   :  { %v1750_v14 = vpop.permute.xlu1 %39  ;;  %v1752_v15 = vpop.permute.xlu0 %37 }
  0x81   :  { %3609 = vst [vmem:[#allocation9_spill] sm:$0xff] %v1750_v14  ;;  %3610 = vst [vmem:[#allocation10_spill] sm:$0xff] %v1752_v15 }
  0x82   :  { %354 = vrot.lane.b32.xlu1 %v1646_v3, %s1586_s30  ;;  %352 = vrot.lane.b32.xlu0 %v1634_v1, %s1586_s30 }
  0x84   :  { %v1756_v16 = vpop.permute.xlu1 %51  ;;  %v1758_v17 = vpop.permute.xlu0 %49 }
  0x85   :  { %3611 = vst [vmem:[#allocation11_spill] sm:$0xff] %v1756_v16  ;;  %3612 = vst [vmem:[#allocation12_spill] sm:$0xff] %v1758_v17 }
  0x86   :  { %358 = vrot.lane.b32.xlu1 %v1641_v2, %s1586_s30  ;;  %356 = vrot.lane.b32.xlu0 %v1629_v0, %s1586_s30 }
  0x88   :  { %v1762_v18 = vpop.permute.xlu1 %55  ;;  %v1764_v19 = vpop.permute.xlu0 %53 }
  0x89   :  { %3613 = vst [vmem:[#allocation13_spill] sm:$0xff] %v1762_v18  ;;  %3614 = vst [vmem:[#allocation14_spill] sm:$0xff] %v1764_v19 }
  0x8a   :  { %362 = vrot.lane.b32.xlu1 %v1653_v4, %s1586_s30  ;;  %360 = vrot.lane.b32.xlu0 %v1658_v5, %s1586_s30 }
  0x8c   :  { %v1768_v20 = vpop.permute.xlu1 %59  ;;  %v1770_v21 = vpop.permute.xlu0 %57 }
  0x8d   :  { %3615 = vst [vmem:[#allocation15_spill] sm:$0xff] %v1768_v20  ;;  %3616 = vst [vmem:[#allocation16_spill] sm:$0xff] %v1770_v21 }
  0x8e   :  { %366 = vrot.lane.b32.xlu1 %v1665_v6, %s1586_s30  ;;  %364 = vrot.lane.b32.xlu0 %v1670_v7, %s1586_s30 }
  0x90   :  { %v1774_v22 = vpop.permute.xlu1 %63  ;;  %v1776_v23 = vpop.permute.xlu0 %61 }
  0x91   :  { %3617 = vst [vmem:[#allocation17_spill] sm:$0xff] %v1774_v22  ;;  %3618 = vst [vmem:[#allocation18_spill] sm:$0xff] %v1776_v23 }
  0x92   :  { %378 = vrot.lane.b32.xlu1 %v1646_v3, %s1587_s2  ;;  %376 = vrot.lane.b32.xlu0 %v1634_v1, %s1587_s2 }
  0x94   :  { %v1780_v24 = vpop.permute.xlu1 %75  ;;  %v1782_v25 = vpop.permute.xlu0 %73 }
  0x95   :  { %3619 = vst [vmem:[#allocation19_spill] sm:$0xff] %v1780_v24  ;;  %3620 = vst [vmem:[#allocation20_spill] sm:$0xff] %v1782_v25 }
  0x96   :  { %382 = vrot.lane.b32.xlu1 %v1641_v2, %s1587_s2  ;;  %380 = vrot.lane.b32.xlu0 %v1629_v0, %s1587_s2 }
  0x98   :  { %v1786_v26 = vpop.permute.xlu1 %79  ;;  %v1788_v27 = vpop.permute.xlu0 %77 }
  0x99   :  { %3621 = vst [vmem:[#allocation21_spill] sm:$0xff] %v1786_v26  ;;  %3622 = vst [vmem:[#allocation22_spill] sm:$0xff] %v1788_v27 }
  0x9a   :  { %386 = vrot.lane.b32.xlu1 %v1653_v4, %s1587_s2  ;;  %384 = vrot.lane.b32.xlu0 %v1658_v5, %s1587_s2 }
  0x9c   :  { %v1792_v28 = vpop.permute.xlu1 %83  ;;  %v1794_v29 = vpop.permute.xlu0 %81 }
  0x9d   :  { %3623 = vst [vmem:[#allocation23_spill] sm:$0xff] %v1792_v28  ;;  %3624 = vst [vmem:[#allocation24_spill] sm:$0xff] %v1794_v29 }
  0x9e   :  { %390 = vrot.lane.b32.xlu1 %v1665_v6, %s1587_s2  ;;  %388 = vrot.lane.b32.xlu0 %v1670_v7, %s1587_s2 }
  0xa0   :  { %v1798_v30 = vpop.permute.xlu1 %87  ;;  %v1800_v31 = vpop.permute.xlu0 %85 }
  0xa1   :  { %3625 = vst [vmem:[#allocation25_spill] sm:$0xff] %v1798_v30  ;;  %3626 = vst [vmem:[#allocation26_spill] sm:$0xff] %v1800_v31 }
  0xa2   :  { %402 = vrot.lane.b32.xlu1 %v1646_v3, %s1588_s3  ;;  %400 = vrot.lane.b32.xlu0 %v1634_v1, %s1588_s3 }
  0xa4   :  { %v1804_v32 = vpop.permute.xlu1 %99  ;;  %v1806_v33 = vpop.permute.xlu0 %97 }
  0xa5   :  { %3627 = vst [vmem:[#allocation27_spill] sm:$0xff] %v1804_v32  ;;  %3628 = vst [vmem:[#allocation28_spill] sm:$0xff] %v1806_v33 }
  0xa6   :  { %406 = vrot.lane.b32.xlu1 %v1641_v2, %s1588_s3  ;;  %404 = vrot.lane.b32.xlu0 %v1629_v0, %s1588_s3 }
  0xa8   :  { %v1810_v34 = vpop.permute.xlu1 %103  ;;  %v1812_v35 = vpop.permute.xlu0 %101 }
  0xa9   :  { %3629 = vst [vmem:[#allocation29_spill] sm:$0xff] %v1810_v34  ;;  %3630 = vst [vmem:[#allocation30_spill] sm:$0xff] %v1812_v35 }
  0xaa   :  { %410 = vrot.lane.b32.xlu1 %v1653_v4, %s1588_s3  ;;  %408 = vrot.lane.b32.xlu0 %v1658_v5, %s1588_s3 }
  0xac   :  { %v1816_v36 = vpop.permute.xlu1 %107  ;;  %v1818_v37 = vpop.permute.xlu0 %105 }
  0xad   :  { %3631 = vst [vmem:[#allocation31_spill] sm:$0xff] %v1816_v36  ;;  %3632 = vst [vmem:[#allocation32_spill] sm:$0xff] %v1818_v37 }
  0xae   :  { %414 = vrot.lane.b32.xlu1 %v1665_v6, %s1588_s3  ;;  %412 = vrot.lane.b32.xlu0 %v1670_v7, %s1588_s3 }
  0xb0   :  { %v1822_v38 = vpop.permute.xlu1 %111  ;;  %v1824_v39 = vpop.permute.xlu0 %109 }
  0xb1   :  { %3633 = vst [vmem:[#allocation33_spill] sm:$0xff] %v1822_v38  ;;  %3634 = vst [vmem:[#allocation34_spill] sm:$0xff] %v1824_v39 }
  0xb2   :  { %426 = vrot.lane.b32.xlu1 %v1646_v3, %s1589_s4  ;;  %424 = vrot.lane.b32.xlu0 %v1634_v1, %s1589_s4 }
  0xb4   :  { %v1828_v40 = vpop.permute.xlu1 %123  ;;  %v1830_v41 = vpop.permute.xlu0 %121 }
  0xb5   :  { %3635 = vst [vmem:[#allocation35_spill] sm:$0xff] %v1828_v40  ;;  %3636 = vst [vmem:[#allocation36_spill] sm:$0xff] %v1830_v41 }
  0xb6   :  { %430 = vrot.lane.b32.xlu1 %v1641_v2, %s1589_s4  ;;  %428 = vrot.lane.b32.xlu0 %v1629_v0, %s1589_s4 }
  0xb8   :  { %v1834_v42 = vpop.permute.xlu1 %127  ;;  %v1836_v43 = vpop.permute.xlu0 %125 }
  0xb9   :  { %3637 = vst [vmem:[#allocation37_spill] sm:$0xff] %v1834_v42  ;;  %3638 = vst [vmem:[#allocation38_spill] sm:$0xff] %v1836_v43 }
  0xba   :  { %434 = vrot.lane.b32.xlu1 %v1653_v4, %s1589_s4  ;;  %432 = vrot.lane.b32.xlu0 %v1658_v5, %s1589_s4 }
  0xbc   :  { %v1840_v44 = vpop.permute.xlu1 %131  ;;  %v1842_v45 = vpop.permute.xlu0 %129 }
  0xbd   :  { %3639 = vst [vmem:[#allocation39_spill] sm:$0xff] %v1840_v44  ;;  %3640 = vst [vmem:[#allocation40_spill] sm:$0xff] %v1842_v45 }
  0xbe   :  { %438 = vrot.lane.b32.xlu1 %v1665_v6, %s1589_s4  ;;  %436 = vrot.lane.b32.xlu0 %v1670_v7, %s1589_s4 }
  0xc0   :  { %v1846_v46 = vpop.permute.xlu1 %135  ;;  %v1848_v47 = vpop.permute.xlu0 %133 }
  0xc1   :  { %3641 = vst [vmem:[#allocation41_spill] sm:$0xff] %v1846_v46  ;;  %3642 = vst [vmem:[#allocation42_spill] sm:$0xff] %v1848_v47 }
  0xc2   :  { %450 = vrot.lane.b32.xlu1 %v1646_v3, %s1590_s5  ;;  %448 = vrot.lane.b32.xlu0 %v1634_v1, %s1590_s5 }
  0xc4   :  { %v1852_v48 = vpop.permute.xlu1 %147  ;;  %v1854_v49 = vpop.permute.xlu0 %145 }
  0xc5   :  { %3643 = vst [vmem:[#allocation43_spill] sm:$0xff] %v1852_v48  ;;  %3644 = vst [vmem:[#allocation44_spill] sm:$0xff] %v1854_v49 }
  0xc6   :  { %454 = vrot.lane.b32.xlu1 %v1641_v2, %s1590_s5  ;;  %452 = vrot.lane.b32.xlu0 %v1629_v0, %s1590_s5 }
  0xc8   :  { %v1858_v50 = vpop.permute.xlu1 %151  ;;  %v1860_v51 = vpop.permute.xlu0 %149 }
  0xc9   :  { %3645 = vst [vmem:[#allocation45_spill] sm:$0xff] %v1858_v50  ;;  %3646 = vst [vmem:[#allocation46_spill] sm:$0xff] %v1860_v51 }
  0xca   :  { %458 = vrot.lane.b32.xlu1 %v1653_v4, %s1590_s5  ;;  %456 = vrot.lane.b32.xlu0 %v1658_v5, %s1590_s5 }
  0xcc   :  { %v1864_v52 = vpop.permute.xlu1 %155  ;;  %v1866_v53 = vpop.permute.xlu0 %153 }
  0xcd   :  { %3647 = vst [vmem:[#allocation47_spill] sm:$0xff] %v1864_v52  ;;  %3648 = vst [vmem:[#allocation48_spill] sm:$0xff] %v1866_v53 }
  0xce   :  { %462 = vrot.lane.b32.xlu1 %v1665_v6, %s1590_s5  ;;  %460 = vrot.lane.b32.xlu0 %v1670_v7, %s1590_s5 }
  0xd0   :  { %v1870_v54 = vpop.permute.xlu1 %159  ;;  %v1872_v55 = vpop.permute.xlu0 %157 }
  0xd1   :  { %3649 = vst [vmem:[#allocation49_spill] sm:$0xff] %v1870_v54  ;;  %3650 = vst [vmem:[#allocation50_spill] sm:$0xff] %v1872_v55 }
  0xd2   :  { %474 = vrot.lane.b32.xlu1 %v1646_v3, %s1591_s6  ;;  %472 = vrot.lane.b32.xlu0 %v1634_v1, %s1591_s6 }
  0xd4   :  { %v1876_v56 = vpop.permute.xlu1 %171  ;;  %v1878_v57 = vpop.permute.xlu0 %169 }
  0xd5   :  { %3651 = vst [vmem:[#allocation51_spill] sm:$0xff] %v1876_v56  ;;  %3652 = vst [vmem:[#allocation52_spill] sm:$0xff] %v1878_v57 }
  0xd6   :  { %478 = vrot.lane.b32.xlu1 %v1641_v2, %s1591_s6  ;;  %476 = vrot.lane.b32.xlu0 %v1629_v0, %s1591_s6 }
  0xd8   :  { %v1882_v58 = vpop.permute.xlu1 %175  ;;  %v1884_v59 = vpop.permute.xlu0 %173 }
  0xd9   :  { %3653 = vst [vmem:[#allocation53_spill] sm:$0xff] %v1882_v58  ;;  %3654 = vst [vmem:[#allocation54_spill] sm:$0xff] %v1884_v59 }
  0xda   :  { %482 = vrot.lane.b32.xlu1 %v1653_v4, %s1591_s6  ;;  %480 = vrot.lane.b32.xlu0 %v1658_v5, %s1591_s6 }
  0xdc   :  { %v1888_v60 = vpop.permute.xlu1 %179  ;;  %v1890_v61 = vpop.permute.xlu0 %177 }
  0xdd   :  { %3655 = vst [vmem:[#allocation55_spill] sm:$0xff] %v1888_v60  ;;  %3656 = vst [vmem:[#allocation56_spill] sm:$0xff] %v1890_v61 }
  0xde   :  { %486 = vrot.lane.b32.xlu1 %v1665_v6, %s1591_s6  ;;  %484 = vrot.lane.b32.xlu0 %v1670_v7, %s1591_s6 }
  0xe0   :  { %v1894_v62 = vpop.permute.xlu1 %183  ;;  %v1896_v63 = vpop.permute.xlu0 %181 }
  0xe1   :  { %3657 = vst [vmem:[#allocation57_spill] sm:$0xff] %v1894_v62  ;;  %3658 = vst [vmem:[#allocation58_spill] sm:$0xff] %v1896_v63 }
  0xe2   :  { %498 = vrot.lane.b32.xlu1 %v1646_v3, %s1592_s7  ;;  %496 = vrot.lane.b32.xlu0 %v1634_v1, %s1592_s7 }
  0xe4   :  { %v1900_v55 = vpop.permute.xlu1 %195  ;;  %v1902_v54 = vpop.permute.xlu0 %193 }
  0xe5   :  { %3659 = vst [vmem:[#allocation59_spill] sm:$0xff] %v1900_v55  ;;  %3660 = vst [vmem:[#allocation60_spill] sm:$0xff] %v1902_v54 }
  0xe6   :  { %502 = vrot.lane.b32.xlu1 %v1641_v2, %s1592_s7  ;;  %500 = vrot.lane.b32.xlu0 %v1629_v0, %s1592_s7 }
  0xe8   :  { %v1906_v61 = vpop.permute.xlu1 %199  ;;  %v1908_v60 = vpop.permute.xlu0 %197 }
  0xe9   :  { %3661 = vst [vmem:[#allocation61_spill] sm:$0xff] %v1906_v61  ;;  %3662 = vst [vmem:[#allocation62_spill] sm:$0xff] %v1908_v60 }
  0xea   :  { %506 = vrot.lane.b32.xlu1 %v1653_v4, %s1592_s7  ;;  %504 = vrot.lane.b32.xlu0 %v1658_v5, %s1592_s7 }
  0xec   :  { %v1912_v63 = vpop.permute.xlu1 %203  ;;  %v1914_v62 = vpop.permute.xlu0 %201 }
  0xed   :  { %3663 = vst [vmem:[#allocation63_spill] sm:$0xff] %v1912_v63  ;;  %3664 = vst [vmem:[#allocation64_spill] sm:$0xff] %v1914_v62 }
  0xee   :  { %510 = vrot.lane.b32.xlu1 %v1665_v6, %s1592_s7  ;;  %508 = vrot.lane.b32.xlu0 %v1670_v7, %s1592_s7  ;;  %s1604_s7 = smov 105  }
  0xf0   :  { %v1918_v54 = vpop.permute.xlu1 %207  ;;  %v1920_v55 = vpop.permute.xlu0 %205 }
  0xf1   :  { %3665 = vst [vmem:[#allocation65_spill] sm:$0xff] %v1918_v54  ;;  %3666 = vst [vmem:[#allocation66_spill] sm:$0xff] %v1920_v55 }
  0xf2   :  { %522 = vrot.lane.b32.xlu1 %v1646_v3, %s1593_s8  ;;  %520 = vrot.lane.b32.xlu0 %v1634_v1, %s1593_s8 }
  0xf4   :  { %v1924_v60 = vpop.permute.xlu1 %354  ;;  %v1926_v61 = vpop.permute.xlu0 %352 }
  0xf5   :  { %3667 = vst [vmem:[#allocation67_spill] sm:$0xff] %v1924_v60  ;;  %3668 = vst [vmem:[#allocation68_spill] sm:$0xff] %v1926_v61 }
  0xf6   :  { %526 = vrot.lane.b32.xlu1 %v1641_v2, %s1593_s8  ;;  %524 = vrot.lane.b32.xlu0 %v1629_v0, %s1593_s8 }
  0xf8   :  { %v1930_v62 = vpop.permute.xlu1 %358  ;;  %v1932_v63 = vpop.permute.xlu0 %356 }
  0xf9   :  { %3669 = vst [vmem:[#allocation69_spill] sm:$0xff] %v1930_v62  ;;  %3670 = vst [vmem:[#allocation70_spill] sm:$0xff] %v1932_v63 }
  0xfa   :  { %530 = vrot.lane.b32.xlu1 %v1653_v4, %s1593_s8  ;;  %528 = vrot.lane.b32.xlu0 %v1658_v5, %s1593_s8 }
  0xfc   :  { %v1936_v55 = vpop.permute.xlu1 %362  ;;  %v1938_v54 = vpop.permute.xlu0 %360 }
  0xfd   :  { %3671 = vst [vmem:[#allocation71_spill] sm:$0xff] %v1936_v55  ;;  %3672 = vst [vmem:[#allocation72_spill] sm:$0xff] %v1938_v54 }
  0xfe   :  { %534 = vrot.lane.b32.xlu1 %v1665_v6, %s1593_s8  ;;  %532 = vrot.lane.b32.xlu0 %v1670_v7, %s1593_s8  ;;  %s1606_s8 = smov 107  }
 0x100   :  { %v1942_v59 = vpop.permute.xlu1 %366  ;;  %v1944_v58 = vpop.permute.xlu0 %364 }
 0x101   :  { %3673 = vst [vmem:[#allocation73_spill] sm:$0xff] %v1942_v59  ;;  %3674 = vst [vmem:[#allocation74_spill] sm:$0xff] %v1944_v58 }
 0x104   :  { %v379_v53 = vpop.permute.xlu1 %378  ;;  %v377_v52 = vpop.permute.xlu0 %376 }
 0x105   :  { %v545_v17 = vsel %vm217_vm0, %v1924_v60, %v379_v53  ;;  %v544_v16 = vsel %vm217_vm0, %v1926_v61, %v377_v52 }
 0x106   :  { %v553_v14 = vsel %vm226_vm1, %v545_v17, %v379_v53  ;;  %v552_v13 = vsel %vm226_vm1, %v544_v16, %v377_v52 }
 0x108   :  { %v383_v47 = vpop.permute.xlu1 %382  ;;  %v381_v46 = vpop.permute.xlu0 %380 }
 0x109   :  { %v547_v15 = vsel %vm217_vm0, %v1930_v62, %v383_v47  ;;  %v546_v12 = vsel %vm217_vm0, %v1932_v63, %v381_v46 }
 0x10a   :  { %v555_v62 = vsel %vm226_vm1, %v547_v15, %v383_v47  ;;  %v554_v52 = vsel %vm226_vm1, %v546_v12, %v381_v46 }
 0x10c   :  { %v1946_v57 = vpop.permute.xlu1 %386  ;;  %v1948_v56 = vpop.permute.xlu0 %384 }
 0x10d   :  { %v549_v16 = vsel %vm217_vm0, %v1936_v55, %v1946_v57  ;;  %v548_v17 = vsel %vm217_vm0, %v1938_v54, %v1948_v56 }
 0x10e   :  { %v557_v12 = vsel %vm226_vm1, %v549_v16, %v1946_v57  ;;  %v556_v46 = vsel %vm226_vm1, %v548_v17, %v1948_v56 }
 0x110   :  { %v1950_v51 = vpop.permute.xlu1 %390  ;;  %v1952_v50 = vpop.permute.xlu0 %388 }
 0x114   :  { %v403_v45 = vpop.permute.xlu1 %402  ;;  %v401_v49 = vpop.permute.xlu0 %400 }
 0x115   :  { %v561_v61 = vsel %vm235_vm2, %v553_v14, %v403_v45  ;;  %v560_v60 = vsel %vm235_vm2, %v552_v13, %v401_v49  ;;  %v551_v14 = vsel %vm217_vm0, %v1942_v59, %v1950_v51 }
 0x116   :  { %v569_v15 = vsel %vm244_vm3, %v561_v61, %v403_v45  ;;  %v568_v47 = vsel %vm244_vm3, %v560_v60, %v401_v49  ;;  %v559_v49 = vsel %vm226_vm1, %v551_v14, %v1950_v51  ;;  %v550_v60 = vsel %vm217_vm0, %v1944_v58, %v1952_v50 }
 0x118   :  { %v1954_v48 = vpop.permute.xlu1 %406  ;;  %v1956_v44 = vpop.permute.xlu0 %404 }
 0x119   :  { %v563_v13 = vsel %vm235_vm2, %v555_v62, %v1954_v48  ;;  %v562_v53 = vsel %vm235_vm2, %v554_v52, %v1956_v44 }
 0x11a   :  { %v571_v61 = vsel %vm244_vm3, %v563_v13, %v1954_v48  ;;  %v570_v56 = vsel %vm244_vm3, %v562_v53, %v1956_v44 }
 0x11c   :  { %v1958_v43 = vpop.permute.xlu1 %410  ;;  %v1960_v42 = vpop.permute.xlu0 %408 }
 0x11d   :  { %v565_v57 = vsel %vm235_vm2, %v557_v12, %v1958_v43  ;;  %v564_v16 = vsel %vm235_vm2, %v556_v46, %v1960_v42 }
 0x120   :  { %v1962_v41 = vpop.permute.xlu1 %414  ;;  %v1964_v40 = vpop.permute.xlu0 %412 }
 0x121   :  { %v567_v51 = vsel %vm235_vm2, %v559_v49, %v1962_v41 }
 0x122   :  { %v575_v12 = vsel %vm244_vm3, %v567_v51, %v1962_v41 }
 0x124   :  { %v1966_v39 = vpop.permute.xlu1 %426  ;;  %v1968_v38 = vpop.permute.xlu0 %424 }
 0x125   :  { %v577_v62 = vsel %vm253_vm4, %v569_v15, %v1966_v39  ;;  %v576_v45 = vsel %vm253_vm4, %v568_v47, %v1968_v38  ;;  %v558_v15 = vsel %vm226_vm1, %v550_v60, %v1952_v50  ;;  %v573_v47 = vsel %vm244_vm3, %v565_v57, %v1958_v43 }
 0x126   :  { %v585_v48 = vsel %vm262_vm5, %v577_v62, %v1966_v39  ;;  %v584_v52 = vsel %vm262_vm5, %v576_v45, %v1968_v38  ;;  %v572_v38 = vsel %vm244_vm3, %v564_v16, %v1960_v42  ;;  %v566_v46 = vsel %vm235_vm2, %v558_v15, %v1964_v40 }
 0x127   :  { %v574_v57 = vsel %vm244_vm3, %v566_v46, %v1964_v40 }
 0x128   :  { %v1970_v37 = vpop.permute.xlu1 %430  ;;  %v1972_v36 = vpop.permute.xlu0 %428 }
 0x129   :  { %v579_v17 = vsel %vm253_vm4, %v571_v61, %v1970_v37  ;;  %v578_v14 = vsel %vm253_vm4, %v570_v56, %v1972_v36 }
 0x12a   :  { %v587_v50 = vsel %vm262_vm5, %v579_v17, %v1970_v37  ;;  %v586_v43 = vsel %vm262_vm5, %v578_v14, %v1972_v36 }
 0x12c   :  { %v1974_v35 = vpop.permute.xlu1 %434  ;;  %v1976_v34 = vpop.permute.xlu0 %432 }
 0x12d   :  { %v581_v62 = vsel %vm253_vm4, %v573_v47, %v1974_v35  ;;  %v580_v45 = vsel %vm253_vm4, %v572_v38, %v1976_v34 }
 0x12e   :  { %v589_v56 = vsel %vm262_vm5, %v581_v62, %v1974_v35  ;;  %v588_v16 = vsel %vm262_vm5, %v580_v45, %v1976_v34 }
 0x130   :  { %v1978_v33 = vpop.permute.xlu1 %438  ;;  %v1980_v32 = vpop.permute.xlu0 %436 }
 0x131   :  { %v583_v42 = vsel %vm253_vm4, %v575_v12, %v1978_v33  ;;  %v582_v17 = vsel %vm253_vm4, %v574_v57, %v1980_v32 }
 0x132   :  { %v591_v51 = vsel %vm262_vm5, %v583_v42, %v1978_v33 }
 0x134   :  { %v1982_v31 = vpop.permute.xlu1 %450  ;;  %v1984_v30 = vpop.permute.xlu0 %448 }
 0x135   :  { %v593_v53 = vsel %vm271_vm6, %v585_v48, %v1982_v31  ;;  %v592_v39 = vsel %vm271_vm6, %v584_v52, %v1984_v30 }
 0x136   :  { %v601_v41 = vsel %vm280_vm7, %v593_v53, %v1982_v31  ;;  %v600_v49 = vsel %vm280_vm7, %v592_v39, %v1984_v30 }
 0x138   :  { %v1986_v29 = vpop.permute.xlu1 %454  ;;  %v1988_v28 = vpop.permute.xlu0 %452 }
 0x139   :  { %v595_v37 = vsel %vm271_vm6, %v587_v50, %v1986_v29  ;;  %v594_v36 = vsel %vm271_vm6, %v586_v43, %v1988_v28 }
 0x13a   :  { %v603_v40 = vsel %vm280_vm7, %v595_v37, %v1986_v29  ;;  %v602_v48 = vsel %vm280_vm7, %v594_v36, %v1988_v28 }
 0x13c   :  { %v1990_v27 = vpop.permute.xlu1 %458  ;;  %v1992_v26 = vpop.permute.xlu0 %456 }
 0x13d   :  { %v597_v52 = vsel %vm271_vm6, %v589_v56, %v1990_v27  ;;  %v596_v35 = vsel %vm271_vm6, %v588_v16, %v1992_v26 }
 0x13e   :  { %v605_v39 = vsel %vm280_vm7, %v597_v52, %v1990_v27  ;;  %v604_v38 = vsel %vm280_vm7, %v596_v35, %v1992_v26 }
 0x140   :  { %v1994_v25 = vpop.permute.xlu1 %462  ;;  %v1996_v24 = vpop.permute.xlu0 %460 }
 0x141   :  { %v599_v34 = vsel %vm271_vm6, %v591_v51, %v1994_v25 }
 0x142   :  { %v607_v12 = vsel %vm280_vm7, %v599_v34, %v1994_v25 }
 0x144   :  { %v1998_v23 = vpop.permute.xlu1 %474  ;;  %v2000_v22 = vpop.permute.xlu0 %472 }
 0x145   :  { %v609_v31 = vsel %vm289_vm8, %v601_v41, %v1998_v23  ;;  %v608_v30 = vsel %vm289_vm8, %v600_v49, %v2000_v22 }
 0x146   :  { %v617_v33 = vsel %vm298_vm9, %v609_v31, %v1998_v23  ;;  %v616_v14 = vsel %vm298_vm9, %v608_v30, %v2000_v22  ;;  %v590_v22 = vsel %vm262_vm5, %v582_v17, %v1980_v32 }
 0x147   :  { %v598_v46 = vsel %vm271_vm6, %v590_v22, %v1996_v24 }
 0x148   :  { %v2002_v21 = vpop.permute.xlu1 %478  ;;  %v2004_v20 = vpop.permute.xlu0 %476  ;;  %v606_v49 = vsel %vm280_vm7, %v598_v46, %v1996_v24 }
 0x149   :  { %v611_v29 = vsel %vm289_vm8, %v603_v40, %v2002_v21  ;;  %v610_v47 = vsel %vm289_vm8, %v602_v48, %v2004_v20 }
 0x14a   :  { %v619_v50 = vsel %vm298_vm9, %v611_v29, %v2002_v21  ;;  %v618_v32 = vsel %vm298_vm9, %v610_v47, %v2004_v20 }
 0x14c   :  { %v2006_v19 = vpop.permute.xlu1 %482  ;;  %v2008_v18 = vpop.permute.xlu0 %480 }
 0x14d   :  { %v613_v43 = vsel %vm289_vm8, %v605_v39, %v2006_v19  ;;  %v612_v27 = vsel %vm289_vm8, %v604_v38, %v2008_v18 }
 0x14e   :  { %v620_v36 = vsel %vm298_vm9, %v612_v27, %v2008_v18 }
 0x150   :  { %v2020_v10 = vpop.permute.xlu1 %486  ;;  %v2022_v9 = vpop.permute.xlu0 %484 }
 0x151   :  { %v615_v57 = vsel %vm289_vm8, %v607_v12, %v2020_v10  ;;  %v614_v24 = vsel %vm289_vm8, %v606_v49, %v2022_v9 }
 0x152   :  { %v623_v52 = vsel %vm298_vm9, %v615_v57, %v2020_v10 }
 0x154   :  { %v2043_v55 = vpop.permute.xlu1 %498  ;;  %v2045_v54 = vpop.permute.xlu0 %496 }
 0x155   :  { %v625_v53 = vsel %vm307_vm10, %v617_v33, %v2043_v55  ;;  %v624_v23 = vsel %vm307_vm10, %v616_v14, %v2045_v54  ;;  %v622_v33 = vsel %vm298_vm9, %v614_v24, %v2022_v9 }
 0x156   :  { %v633_v26 = vsel %vm316_vm11, %v625_v53, %v2043_v55  ;;  %v632_v25 = vsel %vm316_vm11, %v624_v23, %v2045_v54  ;;  %v621_v55 = vsel %vm298_vm9, %v613_v43, %v2006_v19 }
 0x158   :  { %v2078_v44 = vpop.permute.xlu1 %502  ;;  %v2080_v13 = vpop.permute.xlu0 %500 }
 0x159   :  { %v627_v21 = vsel %vm307_vm10, %v619_v50, %v2078_v44  ;;  %v626_v42 = vsel %vm307_vm10, %v618_v32, %v2080_v13 }
 0x15a   :  { %v635_v19 = vsel %vm316_vm11, %v627_v21, %v2078_v44  ;;  %v634_v56 = vsel %vm316_vm11, %v626_v42, %v2080_v13 }
 0x15c   :  { %v2114_v60 = vpop.permute.xlu1 %506  ;;  %v2116_v61 = vpop.permute.xlu0 %504 }
 0x15d   :  { %v629_v51 = vsel %vm307_vm10, %v621_v55, %v2114_v60  ;;  %v628_v17 = vsel %vm307_vm10, %v620_v36, %v2116_v61 }
 0x15e   :  { %v637_v14 = vsel %vm316_vm11, %v629_v51, %v2114_v60  ;;  %v636_v29 = vsel %vm316_vm11, %v628_v17, %v2116_v61  ;;  %v2400_v51 = vld [vmem:[%s3484_s0 + $0x38] sm:$0xff]  ;;  %v2406_v17 = vld [vmem:[%s3484_s0 + $0x30] sm:$0xff] }
 0x160   :  { %v2148_v15 = vpop.permute.xlu1 %510  ;;  %v2150_v28 = vpop.permute.xlu0 %508 }
 0x161   :  { %v631_v53 = vsel %vm307_vm10, %v623_v52, %v2148_v15  ;;  %v630_v23 = vsel %vm307_vm10, %v622_v33, %v2150_v28 }
 0x162   :  { %v639_v12 = vsel %vm316_vm11, %v631_v53, %v2148_v15  ;;  %v638_v46 = vsel %vm316_vm11, %v630_v23, %v2150_v28 }
 0x164   :  { %v523_v62 = vpop.permute.xlu1 %522  ;;  %v521_v45 = vpop.permute.xlu0 %520 }
 0x165   :  { %v641_v41 = vsel %vm325_vm12, %v633_v26, %v523_v62  ;;  %v640_v20 = vsel %vm325_vm12, %v632_v25, %v521_v45 }
 0x166   :  { %v649_v54 = vsel %vm334_vm13, %v641_v41, %v523_v62  ;;  %v648_v37 = vsel %vm334_vm13, %v640_v20, %v521_v45 }
 0x167   :  { %v657_v31 = vsel %vm343_vm14, %v649_v54, %v1646_v3  ;;  %v656_v30 = vsel %vm343_vm14, %v648_v37, %v1634_v1 }
 0x168   :  { %674 = vrot.lane.b32.xlu1 %v657_v31, %s1594_s9  ;;  %v527_v18 = vpop.permute.xlu1 %526  ;;  %672 = vrot.lane.b32.xlu0 %v656_v30, %s1594_s9  ;;  %v525_v16 = vpop.permute.xlu0 %524 }
 0x169   :  { %v643_v40 = vsel %vm325_vm12, %v635_v19, %v527_v18  ;;  %v642_v44 = vsel %vm325_vm12, %v634_v56, %v525_v16  ;;  %v2384_v19 = vld [vmem:[%s3484_s0 + $0x28] sm:$0xff]  ;;  %v2390_v56 = vld [vmem:[%s3484_s0 + $0x20] sm:$0xff] }
 0x16a   :  { %v651_v48 = vsel %vm334_vm13, %v643_v40, %v527_v18  ;;  %v650_v13 = vsel %vm334_vm13, %v642_v44, %v525_v16 }
 0x16b   :  { %v659_v35 = vsel %vm343_vm14, %v651_v48, %v1641_v2  ;;  %v658_v34 = vsel %vm343_vm14, %v650_v13, %v1629_v0  ;;  %v2416_v48 = vld [vmem:[%s3484_s0 + $0x8] sm:$0xff] }
 0x16c   :  { %678 = vrot.lane.b32.xlu1 %v659_v35, %s1594_s9  ;;  %v531_v47 = vpop.permute.xlu1 %530  ;;  %676 = vrot.lane.b32.xlu0 %v658_v34, %s1594_s9  ;;  %v529_v10 = vpop.permute.xlu0 %528 }
 0x16d   :  { %v645_v9 = vsel %vm325_vm12, %v637_v14, %v531_v47  ;;  %v644_v22 = vsel %vm325_vm12, %v636_v29, %v529_v10 }
 0x16e   :  { %v653_v60 = vsel %vm334_vm13, %v645_v9, %v531_v47  ;;  %v652_v61 = vsel %vm334_vm13, %v644_v22, %v529_v10 }
 0x16f   :  { %v661_v39 = vsel %vm343_vm14, %v653_v60, %v1653_v4  ;;  %v660_v38 = vsel %vm343_vm14, %v652_v61, %v1658_v5 }
 0x170   :  { %682 = vrot.lane.b32.xlu1 %v661_v39, %s1594_s9  ;;  %v535_v50 = vpop.permute.xlu1 %534  ;;  %680 = vrot.lane.b32.xlu0 %v660_v38, %s1594_s9  ;;  %v533_v43 = vpop.permute.xlu0 %532 }
 0x171   :  { %v647_v32 = vsel %vm325_vm12, %v639_v12, %v535_v50  ;;  %v646_v27 = vsel %vm325_vm12, %v638_v46, %v533_v43 }
 0x172   :  { %v655_v26 = vsel %vm334_vm13, %v647_v32, %v535_v50  ;;  %v654_v25 = vsel %vm334_vm13, %v646_v27, %v533_v43 }
 0x173   :  { %v663_v15 = vsel %vm343_vm14, %v655_v26, %v1665_v6  ;;  %v662_v28 = vsel %vm343_vm14, %v654_v25, %v1670_v7 }
 0x174   :  { %686 = vrot.lane.b32.xlu1 %v663_v15, %s1594_s9  ;;  %684 = vrot.lane.b32.xlu0 %v662_v28, %s1594_s9 }
 0x178   :  { %707 = vrot.lane.b32.xlu1 %v1646_v3, %s1595_s10  ;;  %705 = vrot.lane.b32.xlu0 %v1634_v1, %s1595_s10 }
 0x17c   :  { %711 = vrot.lane.b32.xlu1 %v1641_v2, %s1595_s10  ;;  %709 = vrot.lane.b32.xlu0 %v1629_v0, %s1595_s10 }
 0x180   :  { %715 = vrot.lane.b32.xlu1 %v1653_v4, %s1595_s10  ;;  %713 = vrot.lane.b32.xlu0 %v1658_v5, %s1595_s10 }
 0x184   :  { %719 = vrot.lane.b32.xlu1 %v1665_v6, %s1595_s10  ;;  %717 = vrot.lane.b32.xlu0 %v1670_v7, %s1595_s10  ;;  %s1607_s10 = smov 108  }
 0x188   :  { %731 = vrot.lane.b32.xlu1 %v1646_v3, %s1596_s11  ;;  %729 = vrot.lane.b32.xlu0 %v1634_v1, %s1596_s11 }
 0x18c   :  { %735 = vrot.lane.b32.xlu1 %v1641_v2, %s1596_s11  ;;  %733 = vrot.lane.b32.xlu0 %v1629_v0, %s1596_s11 }
 0x190   :  { %739 = vrot.lane.b32.xlu1 %v1653_v4, %s1596_s11  ;;  %737 = vrot.lane.b32.xlu0 %v1658_v5, %s1596_s11 }
 0x194   :  { %743 = vrot.lane.b32.xlu1 %v1665_v6, %s1596_s11  ;;  %741 = vrot.lane.b32.xlu0 %v1670_v7, %s1596_s11  ;;  %s1608_s11 = smov 109  }
 0x198   :  { %755 = vrot.lane.b32.xlu1 %v1646_v3, %s1597_s12  ;;  %753 = vrot.lane.b32.xlu0 %v1634_v1, %s1597_s12 }
 0x19c   :  { %759 = vrot.lane.b32.xlu1 %v1641_v2, %s1597_s12  ;;  %757 = vrot.lane.b32.xlu0 %v1629_v0, %s1597_s12 }
 0x1a0   :  { %763 = vrot.lane.b32.xlu1 %v1653_v4, %s1597_s12  ;;  %761 = vrot.lane.b32.xlu0 %v1658_v5, %s1597_s12 }
 0x1a4   :  { %767 = vrot.lane.b32.xlu1 %v1665_v6, %s1597_s12  ;;  %765 = vrot.lane.b32.xlu0 %v1670_v7, %s1597_s12  ;;  %s1609_s12 = smov 110  }
 0x1a8   :  { %779 = vrot.lane.b32.xlu1 %v1646_v3, %s1598_s13  ;;  %777 = vrot.lane.b32.xlu0 %v1634_v1, %s1598_s13 }
 0x1ac   :  { %783 = vrot.lane.b32.xlu1 %v1641_v2, %s1598_s13  ;;  %781 = vrot.lane.b32.xlu0 %v1629_v0, %s1598_s13 }
 0x1b0   :  { %787 = vrot.lane.b32.xlu1 %v1653_v4, %s1598_s13  ;;  %785 = vrot.lane.b32.xlu0 %v1658_v5, %s1598_s13 }
 0x1b4   :  { %791 = vrot.lane.b32.xlu1 %v1665_v6, %s1598_s13  ;;  %789 = vrot.lane.b32.xlu0 %v1670_v7, %s1598_s13  ;;  %s1610_s13 = smov 111  }
 0x1b8   :  { %803 = vrot.lane.b32.xlu1 %v1646_v3, %s1599_s14  ;;  %801 = vrot.lane.b32.xlu0 %v1634_v1, %s1599_s14 }
 0x1bc   :  { %807 = vrot.lane.b32.xlu1 %v1641_v2, %s1599_s14  ;;  %805 = vrot.lane.b32.xlu0 %v1629_v0, %s1599_s14 }
 0x1c0   :  { %811 = vrot.lane.b32.xlu1 %v1653_v4, %s1599_s14  ;;  %809 = vrot.lane.b32.xlu0 %v1658_v5, %s1599_s14 }
 0x1c4   :  { %815 = vrot.lane.b32.xlu1 %v1665_v6, %s1599_s14  ;;  %813 = vrot.lane.b32.xlu0 %v1670_v7, %s1599_s14  ;;  %s1612_s14 = smov 64  }
 0x1c8   :  { %827 = vrot.lane.b32.xlu1 %v1646_v3, %s1600_s15  ;;  %825 = vrot.lane.b32.xlu0 %v1634_v1, %s1600_s15 }
 0x1cc   :  { %831 = vrot.lane.b32.xlu1 %v1641_v2, %s1600_s15  ;;  %829 = vrot.lane.b32.xlu0 %v1629_v0, %s1600_s15 }
 0x1d0   :  { %835 = vrot.lane.b32.xlu1 %v1653_v4, %s1600_s15  ;;  %833 = vrot.lane.b32.xlu0 %v1658_v5, %s1600_s15 }
 0x1d4   :  { %839 = vrot.lane.b32.xlu1 %v1665_v6, %s1600_s15  ;;  %837 = vrot.lane.b32.xlu0 %v1670_v7, %s1600_s15  ;;  %s1613_s15 = smov 96  }
 0x1d8   :  { %851 = vrot.lane.b32.xlu1 %v1646_v3, %s1601_s16  ;;  %849 = vrot.lane.b32.xlu0 %v1634_v1, %s1601_s16 }
 0x1da   :  { %v2308_v62 = vpop.permute.xlu1 %674  ;;  %v2310_v45 = vpop.permute.xlu0 %672 }
 0x1db   :  { %3675 = vst [vmem:[#allocation75_spill] sm:$0xff] %v2308_v62  ;;  %3676 = vst [vmem:[#allocation76_spill] sm:$0xff] %v2310_v45  ;;  %v3756_v45 = vld [vmem:[#allocation21_spill] sm:$0xff] }
 0x1dc   :  { %855 = vrot.lane.b32.xlu1 %v1641_v2, %s1601_s16  ;;  %853 = vrot.lane.b32.xlu0 %v1629_v0, %s1601_s16 }
 0x1de   :  { %v2314_v21 = vpop.permute.xlu1 %678  ;;  %v2316_v42 = vpop.permute.xlu0 %676 }
 0x1df   :  { %3677 = vst [vmem:[#allocation77_spill] sm:$0xff] %v2314_v21  ;;  %3678 = vst [vmem:[#allocation78_spill] sm:$0xff] %v2316_v42  ;;  %v3749_v42 = vld [vmem:[#allocation14_spill] sm:$0xff] }
 0x1e0   :  { %859 = vrot.lane.b32.xlu1 %v1653_v4, %s1601_s16  ;;  %857 = vrot.lane.b32.xlu0 %v1658_v5, %s1601_s16 }
 0x1e2   :  { %v2320_v41 = vpop.permute.xlu1 %682  ;;  %v2322_v20 = vpop.permute.xlu0 %680 }
 0x1e3   :  { %3679 = vst [vmem:[#allocation79_spill] sm:$0xff] %v2320_v41  ;;  %3680 = vst [vmem:[#allocation80_spill] sm:$0xff] %v2322_v20  ;;  %v3748_v41 = vld [vmem:[#allocation13_spill] sm:$0xff] }
 0x1e4   :  { %863 = vrot.lane.b32.xlu1 %v1665_v6, %s1601_s16  ;;  %861 = vrot.lane.b32.xlu0 %v1670_v7, %s1601_s16  ;;  %s1614_s16 = smov [#allocation2]  }
 0x1e6   :  { %v2326_v49 = vpop.permute.xlu1 %686  ;;  %v2328_v55 = vpop.permute.xlu0 %684 }
 0x1e7   :  { %3681 = vst [vmem:[#allocation81_spill] sm:$0xff] %v2326_v49  ;;  %3682 = vst [vmem:[#allocation82_spill] sm:$0xff] %v2328_v55  ;;  %v3745_v55 = vld [vmem:[#allocation10_spill] sm:$0xff] }
 0x1e8   :  { %875 = vrot.lane.b32.xlu1 %v1646_v3, %s1602_s17  ;;  %873 = vrot.lane.b32.xlu0 %v1634_v1, %s1602_s17 }
 0x1ea   :  { %v2332_v54 = vpop.permute.xlu1 %707  ;;  %v2334_v37 = vpop.permute.xlu0 %705 }
 0x1ec   :  { %879 = vrot.lane.b32.xlu1 %v1641_v2, %s1602_s17  ;;  %877 = vrot.lane.b32.xlu0 %v1629_v0, %s1602_s17  ;;  %v2358_v0 = vld [vmem:[%s3484_s0] sm:$0xff] }
 0x1ee   :  { %v2338_v36 = vpop.permute.xlu1 %711  ;;  %v2340_v57 = vpop.permute.xlu0 %709 }
 0x1f0   :  { %883 = vrot.lane.b32.xlu1 %v1653_v4, %s1602_s17  ;;  %881 = vrot.lane.b32.xlu0 %v1658_v5, %s1602_s17 }
 0x1f2   :  { %v2344_v31 = vpop.permute.xlu1 %715  ;;  %v2346_v30 = vpop.permute.xlu0 %713 }
 0x1f4   :  { %887 = vrot.lane.b32.xlu1 %v1665_v6, %s1602_s17  ;;  %885 = vrot.lane.b32.xlu0 %v1670_v7, %s1602_s17  ;;  %v2368_v6 = vld [vmem:[%s3484_s0 + $0x18] sm:$0xff]  ;;  %s1497_s17 = sshll.u32 %s1614_s16, 4  ;;  %s1498_s17 = int_to_ptr.vmem [resolvable:$true] %s1497_s17 }
 0x1f5   :  { %p1559_p1 = scmp.lt.s32.totalorder %s1498_s17, %s1498_s17 }
 0x1f6   :  { %v2350_v1 = vpop.permute.xlu1 %719  ;;  %v2352_v2 = vpop.permute.xlu0 %717 }
 0x1f7   :  { %3683 = vst [vmem:[#allocation83_spill] sm:$0xff] %v2352_v2  ;;  %v3764_v2 = vld [vmem:[#allocation29_spill] sm:$0xff] }
 0x1f8   :  { %1019 = vrot.lane.b32.xlu1 %v1646_v3, %s1603_s18  ;;  %1017 = vrot.lane.b32.xlu0 %v2358_v0, %s1603_s18  ;;  %v2374_v3 = vld [vmem:[%s3484_s0 + $0x10] sm:$0xff]  ;;  %s1605_s0 = smov 106  }
 0x1fa   :  { %v2361_v4 = vpop.permute.xlu1 %731  ;;  %v2363_v5 = vpop.permute.xlu0 %729 }
 0x1fb   :  { %3684 = vst [vmem:[#allocation84_spill] sm:$0xff] %v2361_v4  ;;  %3685 = vst [vmem:[#allocation85_spill] sm:$0xff] %v2363_v5  ;;  %v3744_v4 = vld [vmem:[#allocation9_spill] sm:$0xff] }
 0x1fc   :  { %1023 = vrot.lane.b32.xlu1 %v2368_v6, %s1603_s18  ;;  %1021 = vrot.lane.b32.xlu0 %v2374_v3, %s1603_s18 }
 0x1fe   :  { %v2377_v7 = vpop.permute.xlu1 %735  ;;  %v2379_v24 = vpop.permute.xlu0 %733 }
 0x1ff   :  { %3686 = vst [vmem:[#allocation86_spill] sm:$0xff] %v2377_v7  ;;  %3687 = vst [vmem:[#allocation87_spill] sm:$0xff] %v2379_v24  ;;  %v3743_v24 = vld [vmem:[#allocation8_spill] sm:$0xff] }
 0x200   :  { %1027 = vrot.lane.b32.xlu1 %v2384_v19, %s1603_s18  ;;  %1025 = vrot.lane.b32.xlu0 %v2390_v56, %s1603_s18 }
 0x202   :  { %v2393_v18 = vpop.permute.xlu1 %739  ;;  %v2395_v16 = vpop.permute.xlu0 %737 }
 0x203   :  { %3688 = vst [vmem:[#allocation88_spill] sm:$0xff] %v2393_v18  ;;  %3689 = vst [vmem:[#allocation89_spill] sm:$0xff] %v2395_v16  ;;  %v3741_v16 = vld [vmem:[#allocation6_spill] sm:$0xff] }
 0x204   :  { %1031 = vrot.lane.b32.xlu1 %v2400_v51, %s1603_s18  ;;  %1029 = vrot.lane.b32.xlu0 %v2406_v17, %s1603_s18  ;;  %v221_v18 = vsel %vm217_vm0, %v2368_v6, %v3741_v16  ;;  %s1554_s18 = scalar_lea.vmem %s1498_s17, 1024 }
 0x205   :  { %v230_v49 = vsel %vm226_vm1, %v221_v18, %v3741_v16  ;;  %p1555_p0 = scmp.ne.s32.totalorder %s1498_s17, %s1554_s18  ;;  %p1560_p2 = scmp.lt.s32.totalorder %s1554_s18, %s1554_s18 }
 0x206   :  { %v2409_v40 = vpop.permute.xlu1 %743  ;;  %v2411_v44 = vpop.permute.xlu0 %741 }
 0x207   :  { %3690 = vst [vmem:[#allocation90_spill] sm:$0xff] %v2409_v40  ;;  %3691 = vst [vmem:[#allocation91_spill] sm:$0xff] %v2411_v44  ;;  %p1561_p3 = por %p1560_p2, %p1559_p1 }
 0x208   :  { %1043 = vrot.lane.b32.xlu1 %v2416_v48, %s1604_s7  ;;  %1041 = vrot.lane.b32.xlu0 %v2358_v0, %s1604_s7 }
 0x209   :  { %p1562_p4 = pnand %p1561_p3, %p1555_p0 }
 0x20a   :  { %v2420_v13 = vpop.permute.xlu1 %755  ;;  %v2422_v52 = vpop.permute.xlu0 %753 }
 0x20b   :  { %3692 = vst [vmem:[#allocation92_spill] sm:$0xff] %v2420_v13  ;;  %3693 = vst [vmem:[#allocation93_spill] sm:$0xff] %v2422_v52  ;;  %v3742_v52 = vld [vmem:[#allocation7_spill] sm:$0xff] }
 0x20c   :  { %1047 = vrot.lane.b32.xlu1 %v2368_v6, %s1604_s7  ;;  %1045 = vrot.lane.b32.xlu0 %v2374_v3, %s1604_s7  ;;  %v223_v13 = vsel %vm217_vm0, %v2384_v19, %v3742_v52 }
 0x20e   :  { %v2426_v35 = vpop.permute.xlu1 %759  ;;  %v2428_v34 = vpop.permute.xlu0 %757 }
 0x20f   :  { %3694 = vst [vmem:[#allocation94_spill] sm:$0xff] %v2426_v35  ;;  %3695 = vst [vmem:[#allocation95_spill] sm:$0xff] %v2428_v34  ;;  %v3740_v34 = vld [vmem:[#allocation5_spill] sm:$0xff] }
 0x210   :  { %1051 = vrot.lane.b32.xlu1 %v2384_v19, %s1604_s7  ;;  %1049 = vrot.lane.b32.xlu0 %v2390_v56, %s1604_s7  ;;  %v218_v35 = vsel %vm217_vm0, %v2358_v0, %v3740_v34 }
 0x212   :  { %v2432_v33 = vpop.permute.xlu1 %763  ;;  %v2434_v14 = vpop.permute.xlu0 %761 }
 0x213   :  { %3696 = vst [vmem:[#allocation96_spill] sm:$0xff] %v2432_v33  ;;  %3697 = vst [vmem:[#allocation97_spill] sm:$0xff] %v2434_v14 }
 0x214   :  { %1055 = vrot.lane.b32.xlu1 %v2400_v51, %s1604_s7  ;;  %1053 = vrot.lane.b32.xlu0 %v2406_v17, %s1604_s7 }
 0x216   :  { %v2438_v29 = vpop.permute.xlu1 %767  ;;  %v2440_v47 = vpop.permute.xlu0 %765 }
 0x217   :  { %3698 = vst [vmem:[#allocation98_spill] sm:$0xff] %v2438_v29  ;;  %3699 = vst [vmem:[#allocation99_spill] sm:$0xff] %v2440_v47 }
 0x218   :  { %1067 = vrot.lane.b32.xlu1 %v2416_v48, %s1605_s0  ;;  %1065 = vrot.lane.b32.xlu0 %v2358_v0, %s1605_s0 }
 0x21a   :  { %v2444_v10 = vpop.permute.xlu1 %779  ;;  %v2446_v53 = vpop.permute.xlu0 %777 }
 0x21b   :  { %3700 = vst [vmem:[#allocation100_spill] sm:$0xff] %v2444_v10  ;;  %3701 = vst [vmem:[#allocation101_spill] sm:$0xff] %v2446_v53  ;;  %v220_v53 = vsel %vm217_vm0, %v2374_v3, %v1726_v8  ;;  %v219_v10 = vsel %vm217_vm0, %v2416_v48, %v1736_v11 }
 0x21c   :  { %1071 = vrot.lane.b32.xlu1 %v2368_v6, %s1605_s0  ;;  %1069 = vrot.lane.b32.xlu0 %v2374_v3, %s1605_s0 }
 0x21e   :  { %v2450_v23 = vpop.permute.xlu1 %783  ;;  %v2452_v9 = vpop.permute.xlu0 %781 }
 0x21f   :  { %3702 = vst [vmem:[#allocation102_spill] sm:$0xff] %v2450_v23  ;;  %3703 = vst [vmem:[#allocation103_spill] sm:$0xff] %v2452_v9 }
 0x220   :  { %1075 = vrot.lane.b32.xlu1 %v2384_v19, %s1605_s0  ;;  %1073 = vrot.lane.b32.xlu0 %v2390_v56, %s1605_s0 }
 0x222   :  { %v2456_v22 = vpop.permute.xlu1 %787  ;;  %v2458_v60 = vpop.permute.xlu0 %785 }
 0x223   :  { %3704 = vst [vmem:[#allocation104_spill] sm:$0xff] %v2456_v22  ;;  %3705 = vst [vmem:[#allocation105_spill] sm:$0xff] %v2458_v60 }
 0x224   :  { %1079 = vrot.lane.b32.xlu1 %v2400_v51, %s1605_s0  ;;  %1077 = vrot.lane.b32.xlu0 %v2406_v17, %s1605_s0 }
 0x226   :  { %v2462_v61 = vpop.permute.xlu1 %791  ;;  %v2464_v39 = vpop.permute.xlu0 %789 }
 0x227   :  { %3706 = vst [vmem:[#allocation106_spill] sm:$0xff] %v2462_v61  ;;  %3707 = vst [vmem:[#allocation107_spill] sm:$0xff] %v2464_v39 }
 0x228   :  { %1091 = vrot.lane.b32.xlu1 %v2416_v48, %s1606_s8  ;;  %1089 = vrot.lane.b32.xlu0 %v2358_v0, %s1606_s8 }
 0x22a   :  { %v2468_v38 = vpop.permute.xlu1 %803  ;;  %v2470_v12 = vpop.permute.xlu0 %801 }
 0x22b   :  { %3708 = vst [vmem:[#allocation108_spill] sm:$0xff] %v2468_v38  ;;  %3709 = vst [vmem:[#allocation109_spill] sm:$0xff] %v2470_v12 }
 0x22c   :  { %1095 = vrot.lane.b32.xlu1 %v2368_v6, %s1606_s8  ;;  %1093 = vrot.lane.b32.xlu0 %v2374_v3, %s1606_s8 }
 0x22e   :  { %v2474_v46 = vpop.permute.xlu1 %807  ;;  %v2476_v50 = vpop.permute.xlu0 %805 }
 0x22f   :  { %3710 = vst [vmem:[#allocation110_spill] sm:$0xff] %v2474_v46  ;;  %3711 = vst [vmem:[#allocation111_spill] sm:$0xff] %v2476_v50 }
 0x230   :  { %1099 = vrot.lane.b32.xlu1 %v2384_v19, %s1606_s8  ;;  %1097 = vrot.lane.b32.xlu0 %v2390_v56, %s1606_s8 }
 0x232   :  { %v2480_v43 = vpop.permute.xlu1 %811  ;;  %v2482_v32 = vpop.permute.xlu0 %809 }
 0x233   :  { %3712 = vst [vmem:[#allocation112_spill] sm:$0xff] %v2480_v43  ;;  %3713 = vst [vmem:[#allocation113_spill] sm:$0xff] %v2482_v32 }
 0x234   :  { %1103 = vrot.lane.b32.xlu1 %v2400_v51, %s1606_s8  ;;  %1101 = vrot.lane.b32.xlu0 %v2406_v17, %s1606_s8 }
 0x236   :  { %v2486_v27 = vpop.permute.xlu1 %815  ;;  %v2488_v26 = vpop.permute.xlu0 %813 }
 0x237   :  { %3714 = vst [vmem:[#allocation114_spill] sm:$0xff] %v2486_v27  ;;  %3715 = vst [vmem:[#allocation115_spill] sm:$0xff] %v2488_v26 }
 0x238   :  { %1115 = vrot.lane.b32.xlu1 %v2416_v48, %s1607_s10  ;;  %1113 = vrot.lane.b32.xlu0 %v2358_v0, %s1607_s10 }
 0x23a   :  { %v2492_v25 = vpop.permute.xlu1 %827  ;;  %v2494_v15 = vpop.permute.xlu0 %825 }
 0x23b   :  { %3716 = vst [vmem:[#allocation116_spill] sm:$0xff] %v2492_v25  ;;  %3717 = vst [vmem:[#allocation117_spill] sm:$0xff] %v2494_v15 }
 0x23c   :  { %1119 = vrot.lane.b32.xlu1 %v2368_v6, %s1607_s10  ;;  %1117 = vrot.lane.b32.xlu0 %v2374_v3, %s1607_s10 }
 0x23e   :  { %v2498_v28 = vpop.permute.xlu1 %831  ;;  %v2500_v58 = vpop.permute.xlu0 %829 }
 0x23f   :  { %3718 = vst [vmem:[#allocation118_spill] sm:$0xff] %v2498_v28  ;;  %3719 = vst [vmem:[#allocation119_spill] sm:$0xff] %v2500_v58 }
 0x240   :  { %1123 = vrot.lane.b32.xlu1 %v2384_v19, %s1607_s10  ;;  %1121 = vrot.lane.b32.xlu0 %v2390_v56, %s1607_s10 }
 0x242   :  { %v2504_v59 = vpop.permute.xlu1 %835  ;;  %v2506_v63 = vpop.permute.xlu0 %833 }
 0x243   :  { %3720 = vst [vmem:[#allocation120_spill] sm:$0xff] %v2504_v59  ;;  %3721 = vst [vmem:[#allocation121_spill] sm:$0xff] %v2506_v63 }
 0x244   :  { %1127 = vrot.lane.b32.xlu1 %v2400_v51, %s1607_s10  ;;  %1125 = vrot.lane.b32.xlu0 %v2406_v17, %s1607_s10 }
 0x246   :  { %v2510_v26 = vpop.permute.xlu1 %839  ;;  %v2512_v27 = vpop.permute.xlu0 %837 }
 0x247   :  { %3722 = vst [vmem:[#allocation122_spill] sm:$0xff] %v2510_v26  ;;  %3723 = vst [vmem:[#allocation123_spill] sm:$0xff] %v2512_v27 }
 0x248   :  { %1139 = vrot.lane.b32.xlu1 %v2416_v48, %s1608_s11  ;;  %1137 = vrot.lane.b32.xlu0 %v2358_v0, %s1608_s11 }
 0x24a   :  { %v2516_v58 = vpop.permute.xlu1 %851  ;;  %v2518_v28 = vpop.permute.xlu0 %849 }
 0x24b   :  { %3724 = vst [vmem:[#allocation124_spill] sm:$0xff] %v2516_v58  ;;  %3725 = vst [vmem:[#allocation125_spill] sm:$0xff] %v2518_v28 }
 0x24c   :  { %1143 = vrot.lane.b32.xlu1 %v2368_v6, %s1608_s11  ;;  %1141 = vrot.lane.b32.xlu0 %v2374_v3, %s1608_s11 }
 0x24e   :  { %v2522_v63 = vpop.permute.xlu1 %855  ;;  %v2524_v59 = vpop.permute.xlu0 %853 }
 0x24f   :  { %3726 = vst [vmem:[#allocation126_spill] sm:$0xff] %v2522_v63  ;;  %3727 = vst [vmem:[#allocation127_spill] sm:$0xff] %v2524_v59 }
 0x250   :  { %1147 = vrot.lane.b32.xlu1 %v2384_v19, %s1608_s11  ;;  %1145 = vrot.lane.b32.xlu0 %v2390_v56, %s1608_s11 }
 0x252   :  { %v2528_v27 = vpop.permute.xlu1 %859  ;;  %v2530_v26 = vpop.permute.xlu0 %857 }
 0x253   :  { %3728 = vst [vmem:[#allocation128_spill] sm:$0xff] %v2528_v27  ;;  %3729 = vst [vmem:[#allocation129_spill] sm:$0xff] %v2530_v26 }
 0x254   :  { %1151 = vrot.lane.b32.xlu1 %v2400_v51, %s1608_s11  ;;  %1149 = vrot.lane.b32.xlu0 %v2406_v17, %s1608_s11 }
 0x256   :  { %v2534_v28 = vpop.permute.xlu1 %863  ;;  %v2536_v58 = vpop.permute.xlu0 %861 }
 0x257   :  { %3730 = vst [vmem:[#allocation130_spill] sm:$0xff] %v2534_v28  ;;  %3731 = vst [vmem:[#allocation131_spill] sm:$0xff] %v2536_v58 }
 0x258   :  { %1163 = vrot.lane.b32.xlu1 %v2416_v48, %s1609_s12  ;;  %1161 = vrot.lane.b32.xlu0 %v2358_v0, %s1609_s12 }
 0x25a   :  { %v2540_v59 = vpop.permute.xlu1 %875  ;;  %v2542_v63 = vpop.permute.xlu0 %873 }
 0x25b   :  { %3732 = vst [vmem:[#allocation132_spill] sm:$0xff] %v2540_v59  ;;  %3733 = vst [vmem:[#allocation133_spill] sm:$0xff] %v2542_v63 }
 0x25c   :  { %1167 = vrot.lane.b32.xlu1 %v2368_v6, %s1609_s12  ;;  %1165 = vrot.lane.b32.xlu0 %v2374_v3, %s1609_s12 }
 0x25e   :  { %v2546_v26 = vpop.permute.xlu1 %879  ;;  %v2548_v27 = vpop.permute.xlu0 %877 }
 0x25f   :  { %3734 = vst [vmem:[#allocation134_spill] sm:$0xff] %v2546_v26  ;;  %3735 = vst [vmem:[#allocation135_spill] sm:$0xff] %v2548_v27 }
 0x260   :  { %1171 = vrot.lane.b32.xlu1 %v2384_v19, %s1609_s12  ;;  %1169 = vrot.lane.b32.xlu0 %v2390_v56, %s1609_s12 }
 0x262   :  { %v2552_v58 = vpop.permute.xlu1 %883  ;;  %v2554_v28 = vpop.permute.xlu0 %881 }
 0x263   :  { %3736 = vst [vmem:[#allocation136_spill] sm:$0xff] %v2552_v58  ;;  %3737 = vst [vmem:[#allocation137_spill] sm:$0xff] %v2554_v28 }
 0x264   :  { %1175 = vrot.lane.b32.xlu1 %v2400_v51, %s1609_s12  ;;  %1173 = vrot.lane.b32.xlu0 %v2406_v17, %s1609_s12 }
 0x266   :  { %v2558_v63 = vpop.permute.xlu1 %887  ;;  %v2560_v59 = vpop.permute.xlu0 %885 }
 0x267   :  { %3738 = vst [vmem:[#allocation138_spill] sm:$0xff] %v2558_v63  ;;  %3739 = vst [vmem:[#allocation139_spill] sm:$0xff] %v2560_v59 }
 0x268   :  { %1187 = vrot.lane.b32.xlu1 %v2416_v48, %s1610_s13  ;;  %1185 = vrot.lane.b32.xlu0 %v2358_v0, %s1610_s13  ;;  %v229_v48 = vsel %vm226_vm1, %v220_v53, %v1726_v8  ;;  %v228_v0 = vsel %vm226_vm1, %v219_v10, %v1736_v11  ;;  %v232_v8 = vsel %vm226_vm1, %v223_v13, %v3742_v52  ;;  %v3746_v53 = vld [vmem:[#allocation11_spill] sm:$0xff] }
 0x269   :  { %v237_v11 = vsel %vm235_vm2, %v228_v0, %v3746_v53  ;;  %v3750_v13 = vld [vmem:[#allocation15_spill] sm:$0xff] }
 0x26a   :  { %v1020_v27 = vpop.permute.xlu1 %1019  ;;  %v1018_v26 = vpop.permute.xlu0 %1017  ;;  %v241_v52 = vsel %vm235_vm2, %v232_v8, %v3750_v13 }
 0x26c   :  { %1191 = vrot.lane.b32.xlu1 %v2368_v6, %s1610_s13  ;;  %1189 = vrot.lane.b32.xlu0 %v2374_v3, %s1610_s13  ;;  %v222_v3 = vsel %vm217_vm0, %v2390_v56, %v3743_v24  ;;  %v225_v6 = vsel %vm217_vm0, %v2400_v51, %v3744_v4 }
 0x26d   :  { %v231_v10 = vsel %vm226_vm1, %v222_v3, %v3743_v24  ;;  %v234_v18 = vsel %vm226_vm1, %v225_v6, %v3744_v4  ;;  %v3753_v4 = vld [vmem:[#allocation18_spill] sm:$0xff] }
 0x26e   :  { %v1024_v28 = vpop.permute.xlu1 %1023  ;;  %v1022_v58 = vpop.permute.xlu0 %1021 }
 0x270   :  { %1195 = vrot.lane.b32.xlu1 %v2384_v19, %s1610_s13  ;;  %1193 = vrot.lane.b32.xlu0 %v2390_v56, %s1610_s13  ;;  %v224_v19 = vsel %vm217_vm0, %v2406_v17, %v3745_v55  ;;  %v227_v56 = vsel %vm226_vm1, %v218_v35, %v3740_v34  ;;  %v238_v35 = vsel %vm235_vm2, %v229_v48, %v3749_v42  ;;  %v3751_v34 = vld [vmem:[#allocation16_spill] sm:$0xff]  ;;  %v3752_v48 = vld [vmem:[#allocation17_spill] sm:$0xff] }
 0x271   :  { %v233_v16 = vsel %vm226_vm1, %v224_v19, %v3745_v55  ;;  %v240_v24 = vsel %vm235_vm2, %v231_v10, %v3751_v34  ;;  %v247_v8 = vsel %vm244_vm3, %v238_v35, %v3749_v42  ;;  %v3754_v10 = vld [vmem:[#allocation19_spill] sm:$0xff] }
 0x272   :  { %v1028_v63 = vpop.permute.xlu1 %1027  ;;  %v1026_v32 = vpop.permute.xlu0 %1025  ;;  %v242_v6 = vsel %vm235_vm2, %v233_v16, %v3753_v4  ;;  %v3758_v35 = vld [vmem:[#allocation23_spill] sm:$0xff] }
 0x273   :  { %v251_v42 = vsel %vm244_vm3, %v242_v6, %v3753_v4  ;;  %v3761_v4 = vld [vmem:[#allocation26_spill] sm:$0xff] }
 0x274   :  { %1199 = vrot.lane.b32.xlu1 %v2400_v51, %s1610_s13  ;;  %1197 = vrot.lane.b32.xlu0 %v2406_v17, %s1610_s13  ;;  %v3747_v51 = vld [vmem:[#allocation12_spill] sm:$0xff]  ;;  %v239_v17 = vsel %vm235_vm2, %v230_v49, %v3748_v41  ;;  %v246_v49 = vsel %vm244_vm3, %v237_v11, %v3746_v53  ;;  %v250_v53 = vsel %vm244_vm3, %v241_v52, %v3750_v13 }
 0x275   :  { %v236_v20 = vsel %vm235_vm2, %v227_v56, %v3747_v51  ;;  %v243_v56 = vsel %vm235_vm2, %v234_v18, %v3752_v48  ;;  %v248_v19 = vsel %vm244_vm3, %v239_v17, %v3748_v41  ;;  %v255_v21 = vsel %vm253_vm4, %v246_v49, %v3754_v10  ;;  %v3755_v18 = vld [vmem:[#allocation20_spill] sm:$0xff] }
 0x276   :  { %v1032_v59 = vpop.permute.xlu1 %1031  ;;  %v1030_v43 = vpop.permute.xlu0 %1029  ;;  %v245_v55 = vsel %vm244_vm3, %v236_v20, %v3747_v51  ;;  %v249_v11 = vsel %vm244_vm3, %v240_v24, %v3751_v34  ;;  %v257_v20 = vsel %vm253_vm4, %v248_v19, %v3756_v45  ;;  %v252_v41 = vsel %vm244_vm3, %v243_v56, %v3752_v48  ;;  %v3757_v51 = vld [vmem:[#allocation22_spill] sm:$0xff]  ;;  %v3759_v49 = vld [vmem:[#allocation24_spill] sm:$0xff]  ;;  %v3760_v48 = vld [vmem:[#allocation25_spill] sm:$0xff] }
 0x277   :  { %v254_v16 = vsel %vm253_vm4, %v245_v55, %v3755_v18  ;;  %v256_v17 = vsel %vm253_vm4, %v247_v8, %v3757_v51  ;;  %v259_v13 = vsel %vm253_vm4, %v250_v53, %v3758_v35  ;;  %v264_v24 = vsel %vm262_vm5, %v255_v21, %v3754_v10  ;;  %v3762_v53 = vld [vmem:[#allocation27_spill] sm:$0xff] }
 0x278   :  { %v258_v55 = vsel %vm253_vm4, %v249_v11, %v3759_v49  ;;  %v261_v56 = vsel %vm253_vm4, %v252_v41, %v3760_v48  ;;  %v260_v6 = vsel %vm253_vm4, %v251_v42, %v3761_v4  ;;  %v263_v19 = vsel %vm262_vm5, %v254_v16, %v3755_v18  ;;  %v3763_v11 = vld [vmem:[#allocation28_spill] sm:$0xff] }
 0x279   :  { %v266_v8 = vsel %vm262_vm5, %v257_v20, %v3756_v45  ;;  %v273_v62 = vsel %vm271_vm6, %v264_v24, %v3762_v53  ;;  %v265_v21 = vsel %vm262_vm5, %v256_v17, %v3757_v51  ;;  %v268_v10 = vsel %vm262_vm5, %v259_v13, %v3758_v35  ;;  %v3765_v20 = vld [vmem:[#allocation30_spill] sm:$0xff]  ;;  %v3766_v24 = vld [vmem:[#allocation31_spill] sm:$0xff] }
 0x27a   :  { %v1044_v39 = vpop.permute.xlu1 %1043  ;;  %v1042_v61 = vpop.permute.xlu0 %1041  ;;  %v272_v41 = vsel %vm271_vm6, %v263_v19, %v3763_v11  ;;  %v275_v42 = vsel %vm271_vm6, %v266_v8, %v3764_v2  ;;  %v267_v18 = vsel %vm262_vm5, %v258_v55, %v3759_v49  ;;  %v270_v45 = vsel %vm262_vm5, %v261_v56, %v3760_v48 }
 0x27b   :  { %v1210_v15 = vsel %vm217_vm0, %v1020_v27, %v1044_v39  ;;  %v1209_v25 = vsel %vm217_vm0, %v1018_v26, %v1042_v61  ;;  %v269_v16 = vsel %vm262_vm5, %v260_v6, %v3761_v4  ;;  %v274_v51 = vsel %vm271_vm6, %v265_v21, %v3765_v20  ;;  %v3767_v4 = vld [vmem:[#allocation32_spill] sm:$0xff]  ;;  %v3768_v6 = vld [vmem:[#allocation33_spill] sm:$0xff] }
 0x27c   :  { %v1218_v50 = vsel %vm226_vm1, %v1210_v15, %v1044_v39  ;;  %v1217_v46 = vsel %vm226_vm1, %v1209_v25, %v1042_v61  ;;  %v282_v13 = vsel %vm280_vm7, %v273_v62, %v3762_v53  ;;  %v277_v19 = vsel %vm271_vm6, %v268_v10, %v3766_v24  ;;  %v3770_v10 = vld [vmem:[#allocation35_spill] sm:$0xff] }
 0x27d   :  { %v281_v48 = vsel %vm280_vm7, %v272_v41, %v3763_v11  ;;  %v284_v56 = vsel %vm280_vm7, %v275_v42, %v3764_v2  ;;  %v276_v62 = vsel %vm271_vm6, %v267_v18, %v3767_v4  ;;  %v279_v8 = vsel %vm271_vm6, %v270_v45, %v3768_v6 }
 0x27e   :  { %v1048_v60 = vpop.permute.xlu1 %1047  ;;  %v1046_v22 = vpop.permute.xlu0 %1045  ;;  %v283_v53 = vsel %vm280_vm7, %v274_v51, %v3765_v20  ;;  %v2811_v2 = vsel %vm280_vm7, %v277_v19, %v3766_v24  ;;  %v2830_v20 = vsel %vm280_vm7, %v279_v8, %v3768_v6 }
 0x27f   :  { %v1212_v47 = vsel %vm217_vm0, %v1024_v28, %v1048_v60  ;;  %v1211_v29 = vsel %vm217_vm0, %v1022_v58, %v1046_v22 }
 0x280   :  { %v1220_v12 = vsel %vm226_vm1, %v1212_v47, %v1048_v60  ;;  %v1219_v38 = vsel %vm226_vm1, %v1211_v29, %v1046_v22 }
 0x282   :  { %v1052_v9 = vpop.permute.xlu1 %1051  ;;  %v1050_v23 = vpop.permute.xlu0 %1049 }
 0x283   :  { %v1214_v27 = vsel %vm217_vm0, %v1028_v63, %v1052_v9  ;;  %v1213_v26 = vsel %vm217_vm0, %v1026_v32, %v1050_v23 }
 0x284   :  { %v1222_v39 = vsel %vm226_vm1, %v1214_v27, %v1052_v9  ;;  %v1221_v61 = vsel %vm226_vm1, %v1213_v26, %v1050_v23 }
 0x286   :  { %v1056_v25 = vpop.permute.xlu1 %1055  ;;  %v1054_v15 = vpop.permute.xlu0 %1053 }
 0x287   :  { %v1216_v28 = vsel %vm217_vm0, %v1032_v59, %v1056_v25  ;;  %v1215_v58 = vsel %vm217_vm0, %v1030_v43, %v1054_v15 }
 0x288   :  { %v1224_v47 = vsel %vm226_vm1, %v1216_v28, %v1056_v25  ;;  %v1223_v29 = vsel %vm226_vm1, %v1215_v58, %v1054_v15 }
 0x28a   :  { %v1068_v22 = vpop.permute.xlu1 %1067  ;;  %v1066_v60 = vpop.permute.xlu0 %1065 }
 0x28b   :  { %v1226_v63 = vsel %vm235_vm2, %v1218_v50, %v1068_v22  ;;  %v1225_v32 = vsel %vm235_vm2, %v1217_v46, %v1066_v60 }
 0x28c   :  { %v2589_v9 = vsel %vm244_vm3, %v1226_v63, %v1068_v22  ;;  %v2592_v23 = vsel %vm244_vm3, %v1225_v32, %v1066_v60 }
 0x28e   :  { %v1072_v27 = vpop.permute.xlu1 %1071  ;;  %v1070_v59 = vpop.permute.xlu0 %1069 }
 0x28f   :  { %v1228_v43 = vsel %vm235_vm2, %v1220_v12, %v1072_v27  ;;  %v1227_v26 = vsel %vm235_vm2, %v1219_v38, %v1070_v59 }
 0x290   :  { %v2597_v25 = vsel %vm244_vm3, %v1228_v43, %v1072_v27  ;;  %v2600_v15 = vsel %vm244_vm3, %v1227_v26, %v1070_v59 }
 0x292   :  { %v1076_v50 = vpop.permute.xlu1 %1075  ;;  %v1074_v46 = vpop.permute.xlu0 %1073 }
 0x293   :  { %v1230_v28 = vsel %vm235_vm2, %v1222_v39, %v1076_v50  ;;  %v1229_v58 = vsel %vm235_vm2, %v1221_v61, %v1074_v46 }
 0x294   :  { %v2605_v22 = vsel %vm244_vm3, %v1230_v28, %v1076_v50  ;;  %v2608_v60 = vsel %vm244_vm3, %v1229_v58, %v1074_v46 }
 0x296   :  { %v1080_v12 = vpop.permute.xlu1 %1079  ;;  %v1078_v38 = vpop.permute.xlu0 %1077 }
 0x297   :  { %v1232_v63 = vsel %vm235_vm2, %v1224_v47, %v1080_v12  ;;  %v1231_v32 = vsel %vm235_vm2, %v1223_v29, %v1078_v38 }
 0x298   :  { %v2613_v27 = vsel %vm244_vm3, %v1232_v63, %v1080_v12  ;;  %v2616_v59 = vsel %vm244_vm3, %v1231_v32, %v1078_v38 }
 0x29a   :  { %v2618_v39 = vpop.permute.xlu1 %1091  ;;  %v2620_v61 = vpop.permute.xlu0 %1089 }
 0x29b   :  { %v1242_v49 = vsel %vm253_vm4, %v2589_v9, %v2618_v39  ;;  %v1241_v55 = vsel %vm253_vm4, %v2592_v23, %v2620_v61  ;;  %v3769_v9 = vld [vmem:[#allocation34_spill] sm:$0xff]  ;;  %v291_v23 = vsel %vm289_vm8, %v282_v13, %v3770_v10  ;;  %v3771_v13 = vld [vmem:[#allocation36_spill] sm:$0xff] }
 0x29c   :  { %v278_v21 = vsel %vm271_vm6, %v269_v16, %v3769_v9  ;;  %v1250_v41 = vsel %vm262_vm5, %v1242_v49, %v2618_v39  ;;  %v1249_v42 = vsel %vm262_vm5, %v1241_v55, %v2620_v61  ;;  %v2842_v51 = vsel %vm298_vm9, %v291_v23, %v3770_v10 }
 0x29d   :  { %v290_v24 = vsel %vm289_vm8, %v281_v48, %v3771_v13 }
 0x29e   :  { %v2622_v43 = vpop.permute.xlu1 %1095  ;;  %v2624_v26 = vpop.permute.xlu0 %1093 }
 0x29f   :  { %v1244_v11 = vsel %vm253_vm4, %v2597_v25, %v2622_v43  ;;  %v1243_v18 = vsel %vm253_vm4, %v2600_v15, %v2624_v26  ;;  %v2826_v25 = vsel %vm280_vm7, %v276_v62, %v3767_v4  ;;  %v2838_v15 = vsel %vm280_vm7, %v278_v21, %v3769_v9 }
 0x2a0   :  { %v1252_v19 = vsel %vm262_vm5, %v1244_v11, %v2622_v43  ;;  %v1251_v49 = vsel %vm262_vm5, %v1243_v18, %v2624_v26 }
 0x2a2   :  { %v2626_v50 = vpop.permute.xlu1 %1099  ;;  %v2628_v46 = vpop.permute.xlu0 %1097 }
 0x2a3   :  { %v1246_v55 = vsel %vm253_vm4, %v2605_v22, %v2626_v50  ;;  %v1245_v4 = vsel %vm253_vm4, %v2608_v60, %v2628_v46  ;;  %v2873_v60 = vsel %vm298_vm9, %v290_v24, %v3771_v13 }
 0x2a4   :  { %v1254_v21 = vsel %vm262_vm5, %v1246_v55, %v2626_v50  ;;  %v1253_v10 = vsel %vm262_vm5, %v1245_v4, %v2628_v46 }
 0x2a6   :  { %v2630_v47 = vpop.permute.xlu1 %1103  ;;  %v2632_v29 = vpop.permute.xlu0 %1101 }
 0x2a7   :  { %v1248_v62 = vsel %vm253_vm4, %v2613_v27, %v2630_v47  ;;  %v3772_v27 = vld [vmem:[#allocation37_spill] sm:$0xff]  ;;  %v1247_v11 = vsel %vm253_vm4, %v2616_v59, %v2632_v29 }
 0x2a8   :  { %v1256_v23 = vsel %vm262_vm5, %v1248_v62, %v2630_v47 }
 0x2aa   :  { %v2634_v28 = vpop.permute.xlu1 %1115  ;;  %v2636_v58 = vpop.permute.xlu0 %1113 }
 0x2ab   :  { %v1258_v39 = vsel %vm271_vm6, %v1250_v41, %v2634_v28  ;;  %v1257_v61 = vsel %vm271_vm6, %v1249_v42, %v2636_v58 }
 0x2ac   :  { %v1266_v48 = vsel %vm280_vm7, %v1258_v39, %v2634_v28  ;;  %v1265_v43 = vsel %vm280_vm7, %v1257_v61, %v2636_v58  ;;  %v293_v28 = vsel %vm289_vm8, %v284_v56, %v3772_v27  ;;  %v3773_v39 = vld [vmem:[#allocation38_spill] sm:$0xff] }
 0x2ad   :  { %v292_v61 = vsel %vm289_vm8, %v283_v53, %v3773_v39 }
 0x2ae   :  { %v2638_v12 = vpop.permute.xlu1 %1119  ;;  %v2640_v38 = vpop.permute.xlu0 %1117 }
 0x2af   :  { %v1260_v26 = vsel %vm271_vm6, %v1252_v19, %v2638_v12  ;;  %v1259_v22 = vsel %vm271_vm6, %v1251_v49, %v2640_v38  ;;  %v1255_v19 = vsel %vm262_vm5, %v1247_v11, %v2632_v29 }
 0x2b0   :  { %v1268_v56 = vsel %vm280_vm7, %v1260_v26, %v2638_v12  ;;  %v1267_v41 = vsel %vm280_vm7, %v1259_v22, %v2640_v38 }
 0x2b2   :  { %v2642_v63 = vpop.permute.xlu1 %1123  ;;  %v2644_v32 = vpop.permute.xlu0 %1121 }
 0x2b3   :  { %v1262_v42 = vsel %vm271_vm6, %v1254_v21, %v2642_v63  ;;  %v1261_v50 = vsel %vm271_vm6, %v1253_v10, %v2644_v32 }
 0x2b4   :  { %v1270_v49 = vsel %vm280_vm7, %v1262_v42, %v2642_v63  ;;  %v1269_v53 = vsel %vm280_vm7, %v1261_v50, %v2644_v32 }
 0x2b6   :  { %v2646_v14 = vpop.permute.xlu1 %1127  ;;  %v2648_v33 = vpop.permute.xlu0 %1125 }
 0x2b7   :  { %v1264_v46 = vsel %vm271_vm6, %v1256_v23, %v2646_v14  ;;  %v1263_v4 = vsel %vm271_vm6, %v1255_v19, %v2648_v33 }
 0x2b8   :  { %v1272_v55 = vsel %vm280_vm7, %v1264_v46, %v2646_v14 }
 0x2ba   :  { %v2650_v44 = vpop.permute.xlu1 %1139  ;;  %v2652_v40 = vpop.permute.xlu0 %1137 }
 0x2bb   :  { %v1274_v58 = vsel %vm289_vm8, %v1266_v48, %v2650_v44  ;;  %v1273_v9 = vsel %vm289_vm8, %v1265_v43, %v2652_v40 }
 0x2bc   :  { %v1282_v47 = vsel %vm298_vm9, %v1274_v58, %v2650_v44  ;;  %v1281_v59 = vsel %vm298_vm9, %v1273_v9, %v2652_v40  ;;  %v2920_v40 = vsel %vm298_vm9, %v293_v28, %v3772_v27  ;;  %v1271_v28 = vsel %vm280_vm7, %v1263_v4, %v2648_v33 }
 0x2be   :  { %v2672_v7 = vpop.permute.xlu1 %1143  ;;  %v2674_v5 = vpop.permute.xlu0 %1141 }
 0x2bf   :  { %v1276_v12 = vsel %vm289_vm8, %v1268_v56, %v2672_v7  ;;  %v1275_v13 = vsel %vm289_vm8, %v1267_v41, %v2674_v5 }
 0x2c0   :  { %v1284_v62 = vsel %vm298_vm9, %v1276_v12, %v2672_v7  ;;  %v1283_v29 = vsel %vm298_vm9, %v1275_v13, %v2674_v5 }
 0x2c2   :  { %v2710_v3 = vpop.permute.xlu1 %1147  ;;  %v2712_v0 = vpop.permute.xlu0 %1145 }
 0x2c3   :  { %v1278_v48 = vsel %vm289_vm8, %v1270_v49, %v2710_v3  ;;  %v1277_v63 = vsel %vm289_vm8, %v1269_v53, %v2712_v0 }
 0x2c4   :  { %v1285_v9 = vsel %vm298_vm9, %v1277_v63, %v2712_v0 }
 0x2c6   :  { %v2744_v52 = vpop.permute.xlu1 %1151  ;;  %v2746_v34 = vpop.permute.xlu0 %1149 }
 0x2c7   :  { %v1280_v21 = vsel %vm289_vm8, %v1272_v55, %v2744_v52  ;;  %v1279_v33 = vsel %vm289_vm8, %v1271_v28, %v2746_v34 }
 0x2c8   :  { %v1288_v19 = vsel %vm298_vm9, %v1280_v21, %v2744_v52  ;;  %v3781_v21 = vld [vmem:[#allocation52_spill] sm:$0xff] }
 0x2ca   :  { %v2778_v17 = vpop.permute.xlu1 %1163  ;;  %v2780_v35 = vpop.permute.xlu0 %1161 }
 0x2cb   :  { %v1290_v24 = vsel %vm307_vm10, %v1282_v47, %v2778_v17  ;;  %v1289_v44 = vsel %vm307_vm10, %v1281_v59, %v2780_v35  ;;  %v3775_v47 = vld [vmem:[#allocation43_spill] sm:$0xff] }
 0x2cc   :  { %v1298_v32 = vsel %vm316_vm11, %v1290_v24, %v2778_v17  ;;  %v1297_v14 = vsel %vm316_vm11, %v1289_v44, %v2780_v35  ;;  %v1286_v17 = vsel %vm298_vm9, %v1278_v48, %v2710_v3  ;;  %v309_v59 = vsel %vm307_vm10, %v2842_v51, %v3775_v47  ;;  %v3776_v24 = vld [vmem:[#allocation44_spill] sm:$0xff] }
 0x2cd   :  { %v308_v44 = vsel %vm307_vm10, %v2873_v60, %v3776_v24  ;;  %v1287_v51 = vsel %vm298_vm9, %v1279_v33, %v2746_v34 }
 0x2ce   :  { %v2820_v45 = vpop.permute.xlu1 %1167  ;;  %v2822_v16 = vpop.permute.xlu0 %1165 }
 0x2cf   :  { %v1292_v7 = vsel %vm307_vm10, %v1284_v62, %v2820_v45  ;;  %v1291_v22 = vsel %vm307_vm10, %v1283_v29, %v2822_v16 }
 0x2d0   :  { %v1300_v3 = vsel %vm316_vm11, %v1292_v7, %v2820_v45  ;;  %v1299_v11 = vsel %vm316_vm11, %v1291_v22, %v2822_v16  ;;  %v3774_v45 = vld [vmem:[#allocation39_spill] sm:$0xff] }
 0x2d1   :  { %v295_v16 = vsel %vm289_vm8, %v2811_v2, %v3774_v45 }
 0x2d2   :  { %v2867_v6 = vpop.permute.xlu1 %1171  ;;  %v2869_v8 = vpop.permute.xlu0 %1169 }
 0x2d3   :  { %v1294_v41 = vsel %vm307_vm10, %v1286_v17, %v2867_v6  ;;  %v1293_v42 = vsel %vm307_vm10, %v1285_v9, %v2869_v8  ;;  %v3779_v17 = vld [vmem:[#allocation46_spill] sm:$0xff]  ;;  %v3780_v9 = vld [vmem:[#allocation51_spill] sm:$0xff] }
 0x2d4   :  { %v1302_v53 = vsel %vm316_vm11, %v1294_v41, %v2867_v6  ;;  %v1301_v55 = vsel %vm316_vm11, %v1293_v42, %v2869_v8  ;;  %v301_v6 = vsel %vm298_vm9, %v292_v61, %v3773_v39  ;;  %v3777_v8 = vld [vmem:[#allocation40_spill] sm:$0xff]  ;;  %v317_v61 = vsel %vm316_vm11, %v308_v44, %v3776_v24  ;;  %v3784_v42 = vld [vmem:[#allocation42_spill] sm:$0xff] }
 0x2d5   :  { %v294_v29 = vsel %vm289_vm8, %v2826_v25, %v3777_v8  ;;  %v3788_v44 = vld [vmem:[#allocation54_spill] sm:$0xff] }
 0x2d6   :  { %v2906_v18 = vpop.permute.xlu1 %1175  ;;  %v2908_v38 = vpop.permute.xlu0 %1173 }
 0x2d7   :  { %v1296_v4 = vsel %vm307_vm10, %v1288_v19, %v2906_v18  ;;  %v1295_v62 = vsel %vm307_vm10, %v1287_v51, %v2908_v38  ;;  %v3790_v51 = vld [vmem:[#allocation60_spill] sm:$0xff] }
 0x2d8   :  { %v1304_v25 = vsel %vm316_vm11, %v1296_v4, %v2906_v18  ;;  %v1303_v7 = vsel %vm316_vm11, %v1295_v62, %v2908_v38  ;;  %v3792_v4 = vld [vmem:[#allocation76_spill] sm:$0xff] }
 0x2da   :  { %v1188_v43 = vpop.permute.xlu1 %1187  ;;  %v1186_v26 = vpop.permute.xlu0 %1185 }
 0x2db   :  { %v1306_v27 = vsel %vm325_vm12, %v1298_v32, %v1188_v43  ;;  %v1305_v5 = vsel %vm325_vm12, %v1297_v14, %v1186_v26  ;;  %v304_v14 = vsel %vm298_vm9, %v295_v16, %v3774_v45 }
 0x2dc   :  { %v1314_v35 = vsel %vm334_vm13, %v1306_v27, %v1188_v43  ;;  %v1313_v58 = vsel %vm334_vm13, %v1305_v5, %v1186_v26  ;;  %v318_v43 = vsel %vm316_vm11, %v309_v59, %v3775_v47  ;;  %v3778_v5 = vld [vmem:[#allocation45_spill] sm:$0xff]  ;;  %v3786_v47 = vld [vmem:[#allocation48_spill] sm:$0xff] }
 0x2dd   :  { %v1322_v10 = vsel %vm343_vm14, %v1314_v35, %v2332_v54  ;;  %v1321_v23 = vsel %vm343_vm14, %v1313_v58, %v2334_v37  ;;  %v311_v28 = vsel %vm307_vm10, %v2920_v40, %v3778_v5  ;;  %v310_v35 = vsel %vm307_vm10, %v301_v6, %v3779_v17 }
 0x2de   :  { %1339 = vrot.lane.b32.xlu1 %v1322_v10, %s1594_s9  ;;  %v1192_v0 = vpop.permute.xlu1 %1191  ;;  %1337 = vrot.lane.b32.xlu0 %v1321_v23, %s1594_s9  ;;  %v1190_v56 = vpop.permute.xlu0 %1189  ;;  %v327_v38 = vsel %vm325_vm12, %v318_v43, %v3780_v9  ;;  %v326_v10 = vsel %vm325_vm12, %v317_v61, %v3781_v21  ;;  %v303_v40 = vsel %vm298_vm9, %v294_v29, %v3777_v8  ;;  %v3793_v8 = vld [vmem:[#allocation49_spill] sm:$0xff]  ;;  %v3796_v61 = vld [vmem:[#allocation56_spill] sm:$0xff] }
 0x2df   :  { %v1308_v50 = vsel %vm325_vm12, %v1300_v3, %v1192_v0  ;;  %v1307_v46 = vsel %vm325_vm12, %v1299_v11, %v1190_v56  ;;  %v3782_v3 = vld [vmem:[#allocation41_spill] sm:$0xff]  ;;  %v319_v45 = vsel %vm316_vm11, %v310_v35, %v3779_v17  ;;  %v312_v59 = vsel %vm307_vm10, %v303_v40, %v3786_v47  ;;  %v3800_v35 = vld [vmem:[#allocation78_spill] sm:$0xff] }
 0x2e0   :  { %v1316_v12 = vsel %vm334_vm13, %v1308_v50, %v1192_v0  ;;  %v1315_v13 = vsel %vm334_vm13, %v1307_v46, %v1190_v56  ;;  %v297_v11 = vsel %vm289_vm8, %v2830_v20, %v3782_v3  ;;  %v3783_v56 = vld [vmem:[#allocation83_spill] sm:$0xff]  ;;  %v296_v50 = vsel %vm289_vm8, %v2838_v15, %v3784_v42 }
 0x2e1   :  { %v1324_v49 = vsel %vm343_vm14, %v1316_v12, %v2338_v36  ;;  %v1323_v2 = vsel %vm343_vm14, %v1315_v13, %v2340_v57  ;;  %v320_v46 = vsel %vm316_vm11, %v311_v28, %v3778_v5  ;;  %v3785_v20 = vld [vmem:[#allocation47_spill] sm:$0xff]  ;;  %v336_v15 = vsel %vm334_vm13, %v327_v38, %v3780_v9  ;;  %v3787_v13 = vld [vmem:[#allocation53_spill] sm:$0xff] }
 0x2e2   :  { %1343 = vrot.lane.b32.xlu1 %v1324_v49, %s1594_s9  ;;  %v1196_v60 = vpop.permute.xlu1 %1195  ;;  %1341 = vrot.lane.b32.xlu0 %v1323_v2, %s1594_s9  ;;  %v1194_v52 = vpop.permute.xlu0 %1193  ;;  %v313_v16 = vsel %vm307_vm10, %v304_v14, %v3785_v20  ;;  %v335_v12 = vsel %vm334_vm13, %v326_v10, %v3781_v21  ;;  %v329_v24 = vsel %vm325_vm12, %v320_v46, %v3787_v13  ;;  %v3789_v49 = vld [vmem:[#allocation59_spill] sm:$0xff]  ;;  %v3799_v28 = vld [vmem:[#allocation77_spill] sm:$0xff]  ;;  %v3806_v46 = vld [vmem:[#allocation80_spill] sm:$0xff] }
 0x2e3   :  { %v1310_v34 = vsel %vm325_vm12, %v1302_v53, %v1196_v60  ;;  %v1309_v48 = vsel %vm325_vm12, %v1301_v55, %v1194_v52  ;;  %v328_v19 = vsel %vm325_vm12, %v319_v45, %v3788_v44  ;;  %v345_v2 = vsel %vm343_vm14, %v336_v15, %v3789_v49  ;;  %v3801_v10 = vld [vmem:[#allocation57_spill] sm:$0xff]  ;;  %v3808_v15 = vld [vmem:[#allocation66_spill] sm:$0xff]  ;;  %v3811_v49 = vld [vmem:[#allocation84_spill] sm:$0xff] }
 0x2e4   :  { %v1318_v63 = vsel %vm334_vm13, %v1310_v34, %v1196_v60  ;;  %v1317_v32 = vsel %vm334_vm13, %v1309_v48, %v1194_v52  ;;  %v344_v53 = vsel %vm343_vm14, %v335_v12, %v3790_v51  ;;  %v306_v55 = vsel %vm298_vm9, %v297_v11, %v3782_v3  ;;  %v3791_v60 = vld [vmem:[#allocation75_spill] sm:$0xff]  ;;  %v3812_v51 = vld [vmem:[#allocation85_spill] sm:$0xff] }
 0x2e5   :  { %v1326_v26 = vsel %vm343_vm14, %v1318_v63, %v2344_v31  ;;  %v1325_v39 = vsel %vm343_vm14, %v1317_v32, %v2346_v30  ;;  %v3083_v52 = vsel %vm696_vm15, %v345_v2, %v3791_v60  ;;  %v3087_v62 = vsel %vm696_vm15, %v344_v53, %v3792_v4  ;;  %v3794_v63 = vld [vmem:[#allocation50_spill] sm:$0xff]  ;;  %v3803_v3 = vld [vmem:[#allocation63_spill] sm:$0xff] }
 0x2e6   :  { %1347 = vrot.lane.b32.xlu1 %v1326_v26, %s1594_s9  ;;  %v1200_v22 = vpop.permute.xlu1 %1199  ;;  %1345 = vrot.lane.b32.xlu0 %v1325_v39, %s1594_s9  ;;  %v1198_v27 = vpop.permute.xlu0 %1197  ;;  %v305_v34 = vsel %vm298_vm9, %v296_v50, %v3784_v42  ;;  %v322_v48 = vsel %vm316_vm11, %v313_v16, %v3785_v20  ;;  %v321_v6 = vsel %vm316_vm11, %v312_v59, %v3786_v47  ;;  %v3795_v26 = vld [vmem:[#allocation55_spill] sm:$0xff]  ;;  %v3807_v47 = vld [vmem:[#allocation65_spill] sm:$0xff]  ;;  %v3813_v4 = vld [vmem:[#allocation86_spill] sm:$0xff] }
 0x2e7   :  { %v1312_v58 = vsel %vm325_vm12, %v1304_v25, %v1200_v22  ;;  %v1311_v18 = vsel %vm325_vm12, %v1303_v7, %v1198_v27  ;;  %v315_v29 = vsel %vm307_vm10, %v306_v55, %v3793_v8  ;;  %v314_v32 = vsel %vm307_vm10, %v305_v34, %v3794_v63  ;;  %v3797_v7 = vld [vmem:[#allocation61_spill] sm:$0xff]  ;;  %v3805_v42 = vld [vmem:[#allocation79_spill] sm:$0xff] }
 0x2e8   :  { %v1320_v23 = vsel %vm334_vm13, %v1312_v58, %v1200_v22  ;;  %v1319_v33 = vsel %vm334_vm13, %v1311_v18, %v1198_v27  ;;  %v338_v14 = vsel %vm334_vm13, %v329_v24, %v3787_v13  ;;  %v337_v43 = vsel %vm334_vm13, %v328_v19, %v3788_v44  ;;  %v3798_v27 = vld [vmem:[#allocation62_spill] sm:$0xff]  ;;  %v3809_v13 = vld [vmem:[#allocation81_spill] sm:$0xff] }
 0x2e9   :  { %v1328_v0 = vsel %vm343_vm14, %v1320_v23, %v2350_v1  ;;  %v1327_v41 = vsel %vm343_vm14, %v1319_v33, %v3783_v56  ;;  %v331_v39 = vsel %vm325_vm12, %v322_v48, %v3795_v26  ;;  %v330_v25 = vsel %vm325_vm12, %v321_v6, %v3796_v61  ;;  %v3802_v33 = vld [vmem:[#allocation58_spill] sm:$0xff]  ;;  %v3814_v48 = vld [vmem:[#allocation87_spill] sm:$0xff] }
 0x2ea   :  { %1351 = vrot.lane.b32.xlu1 %v1328_v0, %s1594_s9  ;;  %1349 = vrot.lane.b32.xlu0 %v1327_v41, %s1594_s9  ;;  %s1611_s9 = smov 32   ;;  %v347_v22 = vsel %vm343_vm14, %v338_v14, %v3797_v7  ;;  %v346_v5 = vsel %vm343_vm14, %v337_v43, %v3798_v27  ;;  %v324_v18 = vsel %vm316_vm11, %v315_v29, %v3793_v8  ;;  %v3804_v0 = vld [vmem:[#allocation64_spill] sm:$0xff]  ;;  %v3810_v44 = vld [vmem:[#allocation82_spill] sm:$0xff]  ;;  %v3816_v29 = vld [vmem:[#allocation93_spill] sm:$0xff] }
 0x2eb   :  { %v3117_v17 = vsel %vm696_vm15, %v347_v22, %v3799_v28  ;;  %v3121_v58 = vsel %vm696_vm15, %v346_v5, %v3800_v35  ;;  %v323_v9 = vsel %vm316_vm11, %v314_v32, %v3794_v63  ;;  %v340_v38 = vsel %vm334_vm13, %v331_v39, %v3795_v26  ;;  %v3815_v8 = vld [vmem:[#allocation92_spill] sm:$0xff]  ;;  %v3818_v14 = vld [vmem:[#allocation89_spill] sm:$0xff] }
 0x2ec   :  { %v339_v21 = vsel %vm334_vm13, %v330_v25, %v3796_v61  ;;  %v333_v23 = vsel %vm325_vm12, %v324_v18, %v3801_v10  ;;  %v332_v40 = vsel %vm325_vm12, %v323_v9, %v3802_v33  ;;  %v349_v11 = vsel %vm343_vm14, %v340_v38, %v3803_v3  ;;  %v3817_v63 = vld [vmem:[#allocation88_spill] sm:$0xff]  ;;  %v3819_v61 = vld [vmem:[#allocation94_spill] sm:$0xff]  ;;  %v3822_v27 = vld [vmem:[#allocation101_spill] sm:$0xff] }
 0x2ed   :  { %v348_v41 = vsel %vm343_vm14, %v339_v21, %v3804_v0  ;;  %v3145_v50 = vsel %vm696_vm15, %v349_v11, %v3805_v42  ;;  %v342_v20 = vsel %vm334_vm13, %v333_v23, %v3801_v10  ;;  %v341_v16 = vsel %vm334_vm13, %v332_v40, %v3802_v33  ;;  %v3821_v22 = vld [vmem:[#allocation100_spill] sm:$0xff]  ;;  %v3823_v18 = vld [vmem:[#allocation90_spill] sm:$0xff]  ;;  %v3824_v38 = vld [vmem:[#allocation91_spill] sm:$0xff] }
 0x2ee   :  { %1379 = vrot.lane.b32.xlu1 %v3083_v52, %s1611_s9  ;;  %1377 = vrot.lane.b32.xlu0 %v3087_v62, %s1611_s9  ;;  %v3149_v45 = vsel %vm696_vm15, %v348_v41, %v3806_v46  ;;  %v351_v59 = vsel %vm343_vm14, %v342_v20, %v3807_v47  ;;  %v350_v12 = vsel %vm343_vm14, %v341_v16, %v3808_v15  ;;  %v3825_v10 = vld [vmem:[#allocation96_spill] sm:$0xff]  ;;  %v3826_v33 = vld [vmem:[#allocation97_spill] sm:$0xff]  ;;  %v3827_v41 = vld [vmem:[#allocation102_spill] sm:$0xff] }
 0x2ef   :  { %v3165_v24 = vsel %vm696_vm15, %v351_v59, %v3809_v13  ;;  %v3169_v19 = vsel %vm696_vm15, %v350_v12, %v3810_v44  ;;  %v898_v2 = vsel %vm217_vm0, %v2332_v54, %v3811_v49  ;;  %v897_v53 = vsel %vm217_vm0, %v2334_v37, %v3812_v51  ;;  %v3828_v42 = vld [vmem:[#allocation103_spill] sm:$0xff]  ;;  %v3829_v20 = vld [vmem:[#allocation108_spill] sm:$0xff]  ;;  %v3830_v47 = vld [vmem:[#allocation109_spill] sm:$0xff] }
 0x2f0   :  { %v906_v55 = vsel %vm226_vm1, %v898_v2, %v3811_v49  ;;  %v905_v60 = vsel %vm226_vm1, %v897_v53, %v3812_v51  ;;  %v900_v34 = vsel %vm217_vm0, %v2338_v36, %v3813_v4  ;;  %v899_v6 = vsel %vm217_vm0, %v2340_v57, %v3814_v48  ;;  %v3831_v49 = vld [vmem:[#allocation98_spill] sm:$0xff]  ;;  %v3832_v51 = vld [vmem:[#allocation99_spill] sm:$0xff] }
 0x2f1   :  { %v914_v54 = vsel %vm235_vm2, %v906_v55, %v3815_v8  ;;  %v913_v37 = vsel %vm235_vm2, %v905_v60, %v3816_v29  ;;  %v902_v32 = vsel %vm217_vm0, %v2344_v31, %v3817_v63  ;;  %v901_v43 = vsel %vm217_vm0, %v2346_v30, %v3818_v14  ;;  %v3820_v31 = vld [vmem:[#allocation95_spill] sm:$0xff]  ;;  %v3833_v55 = vld [vmem:[#allocation104_spill] sm:$0xff] }
 0x2f2   :  { %1383 = vrot.lane.b32.xlu1 %v3117_v17, %s1611_s9  ;;  %1381 = vrot.lane.b32.xlu0 %v3121_v58, %s1611_s9  ;;  %v908_v36 = vsel %vm226_vm1, %v900_v34, %v3813_v4  ;;  %v907_v57 = vsel %vm226_vm1, %v899_v6, %v3814_v48  ;;  %v922_v26 = vsel %vm244_vm3, %v914_v54, %v3815_v8  ;;  %v3834_v4 = vld [vmem:[#allocation105_spill] sm:$0xff] }
 0x2f3   :  { %v921_v39 = vsel %vm244_vm3, %v913_v37, %v3816_v29  ;;  %v916_v25 = vsel %vm235_vm2, %v908_v36, %v3819_v61  ;;  %v915_v7 = vsel %vm235_vm2, %v907_v57, %v3820_v31  ;;  %v930_v30 = vsel %vm253_vm4, %v922_v26, %v3821_v22  ;;  %v3835_v29 = vld [vmem:[#allocation110_spill] sm:$0xff]  ;;  %v3838_v36 = vld [vmem:[#allocation117_spill] sm:$0xff] }
 0x2f4   :  { %v929_v5 = vsel %vm253_vm4, %v921_v39, %v3822_v27  ;;  %v910_v28 = vsel %vm226_vm1, %v902_v32, %v3817_v63  ;;  %v909_v35 = vsel %vm226_vm1, %v901_v43, %v3818_v14  ;;  %v904_v9 = vsel %vm217_vm0, %v2350_v1, %v3823_v18  ;;  %v3836_v63 = vld [vmem:[#allocation111_spill] sm:$0xff]  ;;  %v3837_v14 = vld [vmem:[#allocation116_spill] sm:$0xff] }
 0x2f5   :  { %v903_v21 = vsel %vm217_vm0, %v3783_v56, %v3824_v38  ;;  %v918_v23 = vsel %vm235_vm2, %v910_v28, %v3825_v10  ;;  %v917_v40 = vsel %vm235_vm2, %v909_v35, %v3826_v33  ;;  %v924_v3 = vsel %vm244_vm3, %v916_v25, %v3819_v61  ;;  %v3842_v28 = vld [vmem:[#allocation113_spill] sm:$0xff] }
 0x2f6   :  { %1387 = vrot.lane.b32.xlu1 %v3145_v50, %s1611_s9  ;;  %1385 = vrot.lane.b32.xlu0 %v3149_v45, %s1611_s9  ;;  %v923_v11 = vsel %vm244_vm3, %v915_v7, %v3820_v31  ;;  %v938_v0 = vsel %vm262_vm5, %v930_v30, %v3821_v22  ;;  %v937_v1 = vsel %vm262_vm5, %v929_v5, %v3822_v27  ;;  %v3839_v31 = vld [vmem:[#allocation106_spill] sm:$0xff]  ;;  %v3840_v22 = vld [vmem:[#allocation107_spill] sm:$0xff]  ;;  %v3841_v27 = vld [vmem:[#allocation112_spill] sm:$0xff]  ;;  %vm1457_vm0 = vcmask 261120  }
 0x2f7   :  { %v932_v56 = vsel %vm253_vm4, %v924_v3, %v3827_v41  ;;  %v931_v46 = vsel %vm253_vm4, %v923_v11, %v3828_v42  ;;  %v946_v16 = vsel %vm271_vm6, %v938_v0, %v3829_v20  ;;  %v945_v59 = vsel %vm271_vm6, %v937_v1, %v3830_v47  ;;  %v3845_v3 = vld [vmem:[#allocation124_spill] sm:$0xff]  ;;  %v3846_v0 = vld [vmem:[#allocation125_spill] sm:$0xff] }
 0x2f8   :  { %v912_v15 = vsel %vm226_vm1, %v904_v9, %v3823_v18  ;;  %v911_v12 = vsel %vm226_vm1, %v903_v21, %v3824_v38  ;;  %v926_v13 = vsel %vm244_vm3, %v918_v23, %v3825_v10  ;;  %v925_v44 = vsel %vm244_vm3, %v917_v40, %v3826_v33  ;;  %v3843_v10 = vld [vmem:[#allocation118_spill] sm:$0xff]  ;;  %v3844_v33 = vld [vmem:[#allocation119_spill] sm:$0xff] }
 0x2f9   :  { %v920_v2 = vsel %vm235_vm2, %v912_v15, %v3831_v49  ;;  %v919_v53 = vsel %vm235_vm2, %v911_v12, %v3832_v51  ;;  %v934_v60 = vsel %vm253_vm4, %v926_v13, %v3833_v55  ;;  %v933_v34 = vsel %vm253_vm4, %v925_v44, %v3834_v4  ;;  %v3849_v15 = vld [vmem:[#allocation120_spill] sm:$0xff]  ;;  %v3850_v13 = vld [vmem:[#allocation121_spill] sm:$0xff] }
 0x2fa   :  { %1391 = vrot.lane.b32.xlu1 %v3165_v24, %s1611_s9  ;;  %1389 = vrot.lane.b32.xlu0 %v3169_v19, %s1611_s9  ;;  %v940_v48 = vsel %vm262_vm5, %v932_v56, %v3827_v41  ;;  %v939_v6 = vsel %vm262_vm5, %v931_v46, %v3828_v42  ;;  %v954_v8 = vsel %vm280_vm7, %v946_v16, %v3829_v20  ;;  %v3847_v20 = vld [vmem:[#allocation114_spill] sm:$0xff]  ;;  %vm1466_vm1 = vcmask 523264  }
 0x2fb   :  { %v953_v54 = vsel %vm280_vm7, %v945_v59, %v3830_v47  ;;  %v948_v37 = vsel %vm271_vm6, %v940_v48, %v3835_v29  ;;  %v947_v32 = vsel %vm271_vm6, %v939_v6, %v3836_v63  ;;  %v962_v43 = vsel %vm289_vm8, %v954_v8, %v3837_v14  ;;  %v3848_v47 = vld [vmem:[#allocation115_spill] sm:$0xff]  ;;  %v3853_v48 = vld [vmem:[#allocation132_spill] sm:$0xff]  ;;  %v3854_v8 = vld [vmem:[#allocation133_spill] sm:$0xff] }
 0x2fc   :  { %v961_v57 = vsel %vm289_vm8, %v953_v54, %v3838_v36  ;;  %v928_v26 = vsel %vm244_vm3, %v920_v2, %v3831_v49  ;;  %v927_v39 = vsel %vm244_vm3, %v919_v53, %v3832_v51  ;;  %v942_v61 = vsel %vm262_vm5, %v934_v60, %v3833_v55  ;;  %v3851_v55 = vld [vmem:[#allocation126_spill] sm:$0xff] }
 0x2fd   :  { %v941_v25 = vsel %vm262_vm5, %v933_v34, %v3834_v4  ;;  %v936_v7 = vsel %vm253_vm4, %v928_v26, %v3839_v31  ;;  %v935_v30 = vsel %vm253_vm4, %v927_v39, %v3840_v22  ;;  %v950_v5 = vsel %vm271_vm6, %v942_v61, %v3841_v27  ;;  %v3852_v4 = vld [vmem:[#allocation127_spill] sm:$0xff]  ;;  %v3857_v26 = vld [vmem:[#allocation128_spill] sm:$0xff]  ;;  %v3858_v61 = vld [vmem:[#allocation129_spill] sm:$0xff] }
 0x2fe   :  { %v949_v35 = vsel %vm271_vm6, %v941_v25, %v3842_v28  ;;  %v956_v18 = vsel %vm280_vm7, %v948_v37, %v3835_v29  ;;  %v955_v9 = vsel %vm280_vm7, %v947_v32, %v3836_v63  ;;  %v970_v38 = vsel %vm298_vm9, %v962_v43, %v3837_v14  ;;  %v3855_v14 = vld [vmem:[#allocation122_spill] sm:$0xff] }
 0x2ff   :  { %v969_v21 = vsel %vm298_vm9, %v961_v57, %v3838_v36  ;;  %v964_v23 = vsel %vm289_vm8, %v956_v18, %v3843_v10  ;;  %v963_v40 = vsel %vm289_vm8, %v955_v9, %v3844_v33  ;;  %v978_v11 = vsel %vm307_vm10, %v970_v38, %v3845_v3  ;;  %v3856_v36 = vld [vmem:[#allocation123_spill] sm:$0xff] }
 0x300   :  { %v977_v1 = vsel %vm307_vm10, %v969_v21, %v3846_v0  ;;  %v944_v41 = vsel %vm262_vm5, %v936_v7, %v3839_v31  ;;  %v943_v56 = vsel %vm262_vm5, %v935_v30, %v3840_v22  ;;  %v958_v42 = vsel %vm280_vm7, %v950_v5, %v3841_v27  ;;  %v3859_v27 = vld [vmem:[#allocation134_spill] sm:$0xff] }
 0x301   :  { %v957_v46 = vsel %vm280_vm7, %v949_v35, %v3842_v28  ;;  %v952_v16 = vsel %vm271_vm6, %v944_v41, %v3847_v20  ;;  %v951_v59 = vsel %vm271_vm6, %v943_v56, %v3848_v47  ;;  %v966_v12 = vsel %vm289_vm8, %v958_v42, %v3849_v15  ;;  %v3860_v28 = vld [vmem:[#allocation135_spill] sm:$0xff] }
 0x302   :  { %v965_v44 = vsel %vm289_vm8, %v957_v46, %v3850_v13  ;;  %v972_v49 = vsel %vm298_vm9, %v964_v23, %v3843_v10  ;;  %v971_v2 = vsel %vm298_vm9, %v963_v40, %v3844_v33  ;;  %v986_v51 = vsel %vm316_vm11, %v978_v11, %v3845_v3  ;;  %v3861_v10 = vld [vmem:[#allocation130_spill] sm:$0xff]  ;;  %v3862_v33 = vld [vmem:[#allocation131_spill] sm:$0xff] }
 0x303   :  { %v985_v53 = vsel %vm316_vm11, %v977_v1, %v3846_v0  ;;  %v980_v60 = vsel %vm307_vm10, %v972_v49, %v3851_v55  ;;  %v979_v34 = vsel %vm307_vm10, %v971_v2, %v3852_v4  ;;  %v994_v6 = vsel %vm325_vm12, %v986_v51, %v3853_v48  ;;  %v3863_v3 = vld [vmem:[#allocation67_spill] sm:$0xff]  ;;  %v3864_v1 = vld [vmem:[#allocation68_spill] sm:$0xff]  ;;  %v3867_v49 = vld [vmem:[#allocation69_spill] sm:$0xff] }
 0x304   :  { %v993_v54 = vsel %vm325_vm12, %v985_v53, %v3854_v8  ;;  %v960_v29 = vsel %vm280_vm7, %v952_v16, %v3847_v20  ;;  %v959_v37 = vsel %vm280_vm7, %v951_v59, %v3848_v47  ;;  %v974_v63 = vsel %vm298_vm9, %v966_v12, %v3849_v15  ;;  %v3865_v47 = vld [vmem:[#allocation136_spill] sm:$0xff]  ;;  %v3866_v15 = vld [vmem:[#allocation137_spill] sm:$0xff]  ;;  %v3868_v53 = vld [vmem:[#allocation70_spill] sm:$0xff] }
 0x305   :  { %v973_v32 = vsel %vm298_vm9, %v965_v44, %v3850_v13  ;;  %v968_v43 = vsel %vm289_vm8, %v960_v29, %v3855_v14  ;;  %v967_v57 = vsel %vm289_vm8, %v959_v37, %v3856_v36  ;;  %v982_v39 = vsel %vm307_vm10, %v974_v63, %v3857_v26  ;;  %v3870_v29 = vld [vmem:[#allocation139_spill] sm:$0xff] }
 0x306   :  { %v981_v25 = vsel %vm307_vm10, %v973_v32, %v3858_v61  ;;  %v988_v31 = vsel %vm316_vm11, %v980_v60, %v3851_v55  ;;  %v987_v7 = vsel %vm316_vm11, %v979_v34, %v3852_v4  ;;  %v1002_v22 = vsel %vm334_vm13, %v994_v6, %v3853_v48  ;;  %v3871_v63 = vld [vmem:[#allocation71_spill] sm:$0xff] }
 0x307   :  { %v1001_v30 = vsel %vm334_vm13, %v993_v54, %v3854_v8  ;;  %v996_v5 = vsel %vm325_vm12, %v988_v31, %v3859_v27  ;;  %v995_v35 = vsel %vm325_vm12, %v987_v7, %v3860_v28  ;;  %v976_v18 = vsel %vm298_vm9, %v968_v43, %v3855_v14  ;;  %v3869_v8 = vld [vmem:[#allocation138_spill] sm:$0xff]  ;;  %v3872_v43 = vld [vmem:[#allocation72_spill] sm:$0xff]  ;;  %v3873_v31 = vld [vmem:[#allocation73_spill] sm:$0xff] }
 0x308   :  { %v975_v9 = vsel %vm298_vm9, %v967_v57, %v3856_v36  ;;  %v990_v38 = vsel %vm316_vm11, %v982_v39, %v3857_v26  ;;  %v989_v21 = vsel %vm316_vm11, %v981_v25, %v3858_v61  ;;  %v984_v23 = vsel %vm307_vm10, %v976_v18, %v3861_v10 }
 0x309   :  { %v983_v40 = vsel %vm307_vm10, %v975_v9, %v3862_v33  ;;  %v1010_v11 = vsel %vm343_vm14, %v1002_v22, %v3863_v3  ;;  %v1009_v41 = vsel %vm343_vm14, %v1001_v30, %v3864_v1  ;;  %v1004_v42 = vsel %vm334_vm13, %v996_v5, %v3859_v27  ;;  %v3874_v30 = vld [vmem:[#allocation74_spill] sm:$0xff] }
 0x30a   :  { %v1003_v46 = vsel %vm334_vm13, %v995_v35, %v3860_v28  ;;  %v998_v59 = vsel %vm325_vm12, %v990_v38, %v3865_v47  ;;  %v997_v12 = vsel %vm325_vm12, %v989_v21, %v3866_v15  ;;  %v992_v13 = vsel %vm316_vm11, %v984_v23, %v3861_v10 }
 0x30b   :  { %v991_v44 = vsel %vm316_vm11, %v983_v40, %v3862_v33  ;;  %v1012_v2 = vsel %vm343_vm14, %v1004_v42, %v3867_v49  ;;  %v1011_v55 = vsel %vm343_vm14, %v1003_v46, %v3868_v53  ;;  %v1006_v4 = vsel %vm334_vm13, %v998_v59, %v3865_v47 }
 0x30c   :  { %v1005_v34 = vsel %vm334_vm13, %v997_v12, %v3866_v15  ;;  %v1000_v54 = vsel %vm325_vm12, %v992_v13, %v3869_v8  ;;  %v999_v37 = vsel %vm325_vm12, %v991_v44, %v3870_v29  ;;  %v1014_v32 = vsel %vm343_vm14, %v1006_v4, %v3871_v63 }
 0x30d   :  { %v1013_v36 = vsel %vm343_vm14, %v1005_v34, %v3872_v43  ;;  %v1008_v26 = vsel %vm334_vm13, %v1000_v54, %v3869_v8  ;;  %v1007_v39 = vsel %vm334_vm13, %v999_v37, %v3870_v29  ;;  %vm1475_vm2 = vcmask 785408  }
 0x30e   :  { %v1016_v7 = vsel %vm343_vm14, %v1008_v26, %v3873_v31  ;;  %v1015_v27 = vsel %vm343_vm14, %v1007_v39, %v3874_v30 }
 0x350   :  { %v1340_v0 = vpop.permute.xlu1 %1339  ;;  %v1338_v56 = vpop.permute.xlu0 %1337 }
 0x351   :  { %v1362_v20 = vsel %vm696_vm15, %v1010_v11, %v1340_v0  ;;  %v1361_v16 = vsel %vm696_vm15, %v1009_v41, %v1338_v56 }
 0x352   :  { %1411 = vrot.lane.b32.xlu1 %v1362_v20, %s1612_s14  ;;  %1409 = vrot.lane.b32.xlu0 %v1361_v16, %s1612_s14 }
 0x354   :  { %v1344_v51 = vpop.permute.xlu1 %1343  ;;  %v1342_v60 = vpop.permute.xlu0 %1341 }
 0x355   :  { %v1364_v48 = vsel %vm696_vm15, %v1012_v2, %v1344_v51  ;;  %v1363_v6 = vsel %vm696_vm15, %v1011_v55, %v1342_v60 }
 0x356   :  { %1415 = vrot.lane.b32.xlu1 %v1364_v48, %s1612_s14  ;;  %1413 = vrot.lane.b32.xlu0 %v1363_v6, %s1612_s14 }
 0x358   :  { %v1348_v14 = vpop.permute.xlu1 %1347  ;;  %v1346_v57 = vpop.permute.xlu0 %1345 }
 0x359   :  { %v1366_v61 = vsel %vm696_vm15, %v1014_v32, %v1348_v14  ;;  %v1365_v25 = vsel %vm696_vm15, %v1013_v36, %v1346_v57 }
 0x35a   :  { %1419 = vrot.lane.b32.xlu1 %v1366_v61, %s1612_s14  ;;  %1417 = vrot.lane.b32.xlu0 %v1365_v25, %s1612_s14 }
 0x35c   :  { %v1352_v22 = vpop.permute.xlu1 %1351  ;;  %v1350_v5 = vpop.permute.xlu0 %1349 }
 0x35d   :  { %v1368_v28 = vsel %vm696_vm15, %v1016_v7, %v1352_v22  ;;  %v1367_v35 = vsel %vm696_vm15, %v1015_v27, %v1350_v5 }
 0x35e   :  { %1423 = vrot.lane.b32.xlu1 %v1368_v28, %s1612_s14  ;;  %1421 = vrot.lane.b32.xlu0 %v1367_v35, %s1612_s14 }
 0x360   :  { %v1380_v18 = vpop.permute.xlu1 %1379  ;;  %v1378_v9 = vpop.permute.xlu0 %1377 }
 0x362   :  { %1435 = vrot.lane.b32.xlu1 %v1362_v20, %s1613_s15  ;;  %1433 = vrot.lane.b32.xlu0 %v1361_v16, %s1613_s15  ;;  %v1459_v20 = vsel %vm1457_vm0, %v3083_v52, %v1380_v18  ;;  %v1458_v16 = vsel %vm1457_vm0, %v3087_v62, %v1378_v9 }
 0x364   :  { %v1384_v38 = vpop.permute.xlu1 %1383  ;;  %v1382_v21 = vpop.permute.xlu0 %1381 }
 0x365   :  { %v1461_v49 = vsel %vm1457_vm0, %v3117_v17, %v1384_v38  ;;  %v1460_v52 = vsel %vm1457_vm0, %v3121_v58, %v1382_v21 }
 0x366   :  { %1439 = vrot.lane.b32.xlu1 %v1364_v48, %s1613_s15  ;;  %1437 = vrot.lane.b32.xlu0 %v1363_v6, %s1613_s15 }
 0x368   :  { %v1388_v10 = vpop.permute.xlu1 %1387  ;;  %v1386_v23 = vpop.permute.xlu0 %1385 }
 0x369   :  { %v1463_v4 = vsel %vm1457_vm0, %v3145_v50, %v1388_v10  ;;  %v1462_v17 = vsel %vm1457_vm0, %v3149_v45, %v1386_v23 }
 0x36a   :  { %1443 = vrot.lane.b32.xlu1 %v1366_v61, %s1613_s15  ;;  %1441 = vrot.lane.b32.xlu0 %v1365_v25, %s1613_s15 }
 0x36c   :  { %v1392_v33 = vpop.permute.xlu1 %1391  ;;  %v1390_v40 = vpop.permute.xlu0 %1389 }
 0x36d   :  { %v1465_v50 = vsel %vm1457_vm0, %v3165_v24, %v1392_v33  ;;  %v1464_v45 = vsel %vm1457_vm0, %v3169_v19, %v1390_v40 }
 0x36e   :  { %1447 = vrot.lane.b32.xlu1 %v1368_v28, %s1613_s15  ;;  %1445 = vrot.lane.b32.xlu0 %v1367_v35, %s1613_s15 }
 0x3c4   :  { %v1412_v3 = vpop.permute.xlu1 %1411  ;;  %v1410_v11 = vpop.permute.xlu0 %1409 }
 0x3c5   :  { %v1468_v47 = vsel %vm1466_vm1, %v1459_v20, %v1412_v3  ;;  %v1467_v59 = vsel %vm1466_vm1, %v1458_v16, %v1410_v11 }
 0x3c8   :  { %v1416_v0 = vpop.permute.xlu1 %1415  ;;  %v1414_v1 = vpop.permute.xlu0 %1413 }
 0x3c9   :  { %v1470_v62 = vsel %vm1466_vm1, %v1461_v49, %v1416_v0  ;;  %v1469_v2 = vsel %vm1466_vm1, %v1460_v52, %v1414_v1 }
 0x3cc   :  { %v1420_v41 = vpop.permute.xlu1 %1419  ;;  %v1418_v56 = vpop.permute.xlu0 %1417 }
 0x3cd   :  { %v1472_v58 = vsel %vm1466_vm1, %v1463_v4, %v1420_v41  ;;  %v1471_v34 = vsel %vm1466_vm1, %v1462_v17, %v1418_v56 }
 0x3d0   :  { %v1424_v42 = vpop.permute.xlu1 %1423  ;;  %v1422_v46 = vpop.permute.xlu0 %1421 }
 0x3d1   :  { %v1474_v29 = vsel %vm1466_vm1, %v1465_v50, %v1424_v42  ;;  %v1473_v37 = vsel %vm1466_vm1, %v1464_v45, %v1422_v46 }
 0x3d4   :  { %v1436_v15 = vpop.permute.xlu1 %1435  ;;  %v1434_v12 = vpop.permute.xlu0 %1433 }
 0x3d5   :  { %v1477_v13 = vsel %vm1475_vm2, %v1468_v47, %v1436_v15  ;;  %v1476_v44 = vsel %vm1475_vm2, %v1467_v59, %v1434_v12 }
 0x3d6   :  { %1485 = vst [vmem:[#allocation2 + $0x8] sm:$0xff] %v1477_v13  ;;  %1484 = vst [vmem:[#allocation2] sm:$0xff] %v1476_v44 }
 0x3d8   :  { %v1440_v51 = vpop.permute.xlu1 %1439  ;;  %v1438_v53 = vpop.permute.xlu0 %1437 }
 0x3d9   :  { %v1479_v55 = vsel %vm1475_vm2, %v1470_v62, %v1440_v51  ;;  %v1478_v60 = vsel %vm1475_vm2, %v1469_v2, %v1438_v53 }
 0x3da   :  { %1487 = vst [vmem:[#allocation2 + $0x18] sm:$0xff] %v1479_v55  ;;  %1486 = vst [vmem:[#allocation2 + $0x10] sm:$0xff] %v1478_v60 }
 0x3dc   :  { %v1444_v48 = vpop.permute.xlu1 %1443  ;;  %v1442_v6 = vpop.permute.xlu0 %1441 }
 0x3dd   :  { %v1481_v8 = vsel %vm1475_vm2, %v1472_v58, %v1444_v48  ;;  %v1480_v54 = vsel %vm1475_vm2, %v1471_v34, %v1442_v6 }
 0x3de   :  { %1489 = vst [vmem:[#allocation2 + $0x28] sm:$0xff] %v1481_v8  ;;  %1488 = vst [vmem:[#allocation2 + $0x20] sm:$0xff] %v1480_v54 }
 0x3e0   :  { %v1448_v63 = vpop.permute.xlu1 %1447  ;;  %v1446_v32 = vpop.permute.xlu0 %1445 }
 0x3e1   :  { %v1483_v14 = vsel %vm1475_vm2, %v1474_v29, %v1448_v63  ;;  %v1482_v43 = vsel %vm1475_vm2, %v1473_v37, %v1446_v32 }
 0x3e2   :  { %1491 = vst [vmem:[#allocation2 + $0x38] sm:$0xff] %v1483_v14  ;;  %1490 = vst [vmem:[#allocation2 + $0x30] sm:$0xff] %v1482_v43 }
 0x3e3   :  { %1565 = shalt.err (!%p1562_p4)
}
 0x3e4   :  { %s1566_s21 = scalar_lea.hbm %s3485_s1, 1024 }
 0x3e5   :  { %p1567_p5 = scmp.ne.s32.totalorder %s3485_s1, %s1566_s21  ;;  %p1570_p6 = scmp.lt.u32.totalorder %s1566_s21, %s3485_s1 }
 0x3e7   :  { %p1572_p7 = pnand %p1570_p6, %p1567_p5 }
 0x3e9   :  { %1575 = shalt.err (!%p1572_p7)
}
 0x3ea   :  { %s1615_s26 = smov 128  }
 0x3eb   :  { %1503 = dma.vmem_to_hbm [thread:$0]  %s1498_s17, 1024, %s3485_s1, [#allocation3], %s1615_s26, %s1615_s26, %s1585_s29  }
 0x3ec   :  { %1576 = dma.done.wait [#allocation3], 1024  }
 0x3ed   :  { %1577 = vsyncadd [#allocation3], 4294966272 }
 0x3ee   :  { %1507 = vsyncpa [#allocation3], 1 }

</bundles_post_ra>
